<compile_context>
chip_gen: v6e
topology: v6e:2x2x1
jax: 0.10.0
libtpu: 0.0.40
codegen_flags: <defaults>
</compile_context>

<pallas_src>
import functools

import jax
import jax.numpy as jnp
import numpy as np
from jax import lax
from jax.experimental import pallas as pl
from jax.experimental.pallas import tpu as pltpu

# ---------------------------------------------------------------------------
# Config (small synthetic instance of the module's cfg)
# ---------------------------------------------------------------------------
BATCH = 2
IN_CHANNELS = 3
IN_H = IN_W = 16
STEM_CHANNELS = 8
BODY_CHANNELS = [[8, 8, 16], [16, 8, 16]]        # [in, bottleneck, out]
BODY_CONFIG = [[0, [1, 1]], [1, None]]           # block0: Bottleneck, block1: StriderBlock
STRIDE_OPTIONS = [[False, (1, 1)], [False, (2, 2)], [True, (2, 2)]]
RETURN_FEATURES = [False, True]
NUM_CLASSES = 10
OUT_CHANNELS = BODY_CHANNELS[-1][2]              # 16 (USE_FPN = False)

STEM_OH = (IN_H + 2 * 3 - 7) // 2 + 1            # 8
STEM_OW = (IN_W + 2 * 3 - 7) // 2 + 1            # 8
POOL_OH = (STEM_OH + 2 * 1 - 3) // 2 + 1         # 4
POOL_OW = (STEM_OW + 2 * 1 - 3) // 2 + 1         # 4
M_STEM = BATCH * STEM_OH * STEM_OW               # 128  stem conv output rows
M_BODY = BATCH * POOL_OH * POOL_OW               # 32   body activation rows


# ---------------------------------------------------------------------------
# Constant matrices built once on the host (numpy)
# ---------------------------------------------------------------------------
def _tap_gather_matrix(n, h, w, kh, kw, stride, pad):
    """0/1 matrix G [kh*kw*M, N*H*W]: (G @ X)[t*M + m, :] is tap t of output row m.

    Rows for out-of-range (padding) taps are all-zero, which reproduces
    zero-padding for convs and is a safe identity for max over post-ReLU data.
    """
    oh = (h + 2 * pad - kh) // stride + 1
    ow = (w + 2 * pad - kw) // stride + 1
    m = n * oh * ow
    g = np.zeros((kh * kw * m, n * h * w), np.float32)
    for b in range(n):
        for y in range(oh):
            for z in range(ow):
                row = (b * oh + y) * ow + z
                for di in range(kh):
                    for dj in range(kw):
                        ih = y * stride - pad + di
                        iw = z * stride - pad + dj
                        if 0 <= ih < h and 0 <= iw < w:
                            t = di * kw + dj
                            g[t * m + row, (b * h + ih) * w + iw] = 1.0
    return g


def _avg_matrix(n, h, w):
    """[N, N*H*W] matrix implementing AdaptiveAvgPool2d((1,1)) as a matmul."""
    a = np.zeros((n, n * h * w), np.float32)
    for b in range(n):
        a[b, b * h * w:(b + 1) * h * w] = 1.0 / (h * w)
    return a


# ---------------------------------------------------------------------------
# The single fused Pallas kernel
# ---------------------------------------------------------------------------
def _fused_forward_kernel(
        stem_patches_ref, stem_w_ref, stem_b_ref,
        g_pool_ref, g_conv3_ref, avg_ref,
        b0_dw_ref, b0_db_ref,
        b0_w1_ref, b0_b1_ref, b0_w2_ref, b0_b2_ref, b0_w3_ref, b0_b3_ref,
        b1_w1_ref, b1_b1_ref, b1_w2_ref, b1_b2_ref, b1_w3_ref, b1_b3_ref,
        fc_w_ref, fc_b_ref,
        out_ref):
    m = g_conv3_ref.shape[1]                 # = M_BODY (body activation rows)

    def mm(a, b):
        # bf16 x bf16 MXU matmul with f32 accumulation.
        return jnp.dot(a.astype(jnp.bfloat16), b.astype(jnp.bfloat16),
                       preferred_element_type=jnp.float32)

    # ---- Stem: 7x7 s2 conv (im2col matmul) + folded-BN bias + ReLU --------
    stem = mm(stem_patches_ref[...], stem_w_ref[...]) + stem_b_ref[...]
    stem = jnp.maximum(stem, 0.0)            # [M_STEM, 8], rows = (n, h, w)

    # ---- MaxPool 3x3 s2 p1: constant tap-gather matmul + elementwise max --
    # (zero rows of g_pool are a safe identity: post-ReLU activations >= 0)
    pool_taps = mm(g_pool_ref[...], stem)    # [9*m, 8]
    x = pool_taps[0:m]
    for t in range(1, 9):
        x = jnp.maximum(x, pool_taps[t * m:(t + 1) * m])     # [m, 8]

    g_conv3 = g_conv3_ref[...]

    def conv3x3(a, w_ref, b_ref):
        # 3x3 stride-1 pad-1 conv: gather the 9 shifted taps with one matmul,
        # then accumulate 9 per-tap [m, Cin] @ [Cin, Cout] matmuls.
        taps = mm(g_conv3, a)                # [9*m, Cin]
        acc = mm(taps[0:m], w_ref[0])
        for t in range(1, 9):
            acc = acc + mm(taps[t * m:(t + 1) * m], w_ref[t])
        return acc + b_ref[...]

    # ---- block0: Bottleneck(8 -> 8 -> 16) with 1x1 downsample --------------
    identity = mm(x, b0_dw_ref[...]) + b0_db_ref[...]                  # [m, 16]
    out = jnp.maximum(mm(x, b0_w1_ref[...]) + b0_b1_ref[...], 0.0)     # [m, 8]
    out = jnp.maximum(conv3x3(out, b0_w2_ref, b0_b2_ref), 0.0)         # [m, 8]
    out = mm(out, b0_w3_ref[...]) + b0_b3_ref[...]                     # [m, 16]
    x = jnp.maximum(out + identity, 0.0)      # trailing ReLU from Strider.forward

    # ---- block1: StriderBlock(16 -> 8 -> 16), stride option 0 (plain conv) -
    identity = x                              # no downsample (in == out channels)
    out = jnp.maximum(mm(x, b1_w1_ref[...]) + b1_b1_ref[...], 0.0)     # [m, 8]
    out = jnp.maximum(conv3x3(out, b1_w2_ref, b1_b2_ref), 0.0)         # [m, 8]
    out = mm(out, b1_w3_ref[...]) + b1_b3_ref[...]                     # [m, 16]
    x = jnp.maximum(out + identity, 0.0)

    # ---- head: AdaptiveAvgPool2d((1,1)) + flatten + Linear, fused in-kernel -
    pooled = mm(avg_ref[...], x)                                       # [N, 16]
    out_ref[...] = mm(pooled, fc_w_ref[...]) + fc_b_ref[...]           # [N, 10]


# ---------------------------------------------------------------------------
# Host-side glue
# ---------------------------------------------------------------------------
def _stem_patches(x_nhwc):
    """im2col for the 7x7 stride-2 pad-3 stem conv -> [N*OH*OW, 7*7*C] (bf16).

    Built by XLA right before the single fused kernel (tiny: ~37 KB bf16);
    tap ordering (i, j, c) matches the HWIO weight reshape.
    """
    n, h, w, c = x_nhwc.shape
    oh = (h + 6 - 7) // 2 + 1
    ow = (w + 6 - 7) // 2 + 1
    xp = jnp.pad(x_nhwc, ((0, 0), (3, 3), (3, 3), (0, 0)))
    cols = []
    for i in range(7):
        for j in range(7):
            cols.append(xp[:, i:i + 2 * (oh - 1) + 1:2, j:j + 2 * (ow - 1) + 1:2, :])
    patches = jnp.concatenate(cols, axis=-1)
    return patches.reshape(n * oh * ow, 7 * 7 * c).astype(jnp.bfloat16)


def prepare_inference_params(params, batch=BATCH):
    """One-time (outside the hot path) parameter prep:
    fold the BN scale into each conv weight, cast matmul operands to bf16,
    reshape weights into matmul form, and build the constant tap-gather /
    averaging matrices consumed by the fused kernel."""
    bf16 = jnp.bfloat16
    f32 = jnp.float32

    def fold(w_hwio, bn):
        scale, bias = bn
        return (w_hwio * scale).astype(bf16), bias.reshape(1, -1).astype(f32)

    stem_w, stem_b = fold(params['stem_w'], params['stem_bn'])
    stem_w = stem_w.reshape(7 * 7 * IN_CHANNELS, STEM_CHANNELS)

    def fold_1x1(name):
        w, b = fold(params[name + '_w'], params[name + '_bn'])
        return w.reshape(w.shape[2], w.shape[3]), b

    def fold_3x3(name):
        w, b = fold(params[name + '_w'], params[name + '_bn'])
        return w.reshape(9, w.shape[2], w.shape[3]), b

    b0_dw, b0_db = fold_1x1('b0_down')
    b0_w1, b0_b1 = fold_1x1('b0_c1')
    b0_w2, b0_b2 = fold_3x3('b0_c2')
    b0_w3, b0_b3 = fold_1x1('b0_c3')
    b1_w1, b1_b1 = fold_1x1('b1_c1')
    b1_w2, b1_b2 = fold_3x3('b1_c2')
    b1_w3, b1_b3 = fold_1x1('b1_c3')

    g_pool = jnp.asarray(_tap_gather_matrix(batch, STEM_OH, STEM_OW, 3, 3, 2, 1), bf16)
    g_conv3 = jnp.asarray(_tap_gather_matrix(batch, POOL_OH, POOL_OW, 3, 3, 1, 1), bf16)
    avg_mat = jnp.asarray(_avg_matrix(batch, POOL_OH, POOL_OW), bf16)

    fc_w = params['fc_w'].astype(bf16)
    fc_b = params['fc_b'].reshape(1, NUM_CLASSES).astype(f32)

    return (stem_w, stem_b, g_pool, g_conv3, avg_mat,
            b0_dw, b0_db, b0_w1, b0_b1, b0_w2, b0_b2, b0_w3, b0_b3,
            b1_w1, b1_b1, b1_w2, b1_b2, b1_w3, b1_b3,
            fc_w, fc_b)


def strider_classifier_forward(prep, x_nchw, stride_combo=(0,)):
    """Forward pass of StriderClassifier (USE_FPN=False) as one fused kernel."""
    use_tconv, stride = STRIDE_OPTIONS[stride_combo[0]]
    # TODO(synk): conv_transpose2d stride option and FeatureResize for non-unit
    # strides of StriderBlock are not implemented (never selected with
    # stride_combo=(0,)); the prebuilt tap-gather matrix encodes stride (1, 1).
    assert (not use_tconv) and tuple(stride) == (1, 1)

    x = jnp.transpose(x_nchw, (0, 2, 3, 1)).astype(jnp.float32)   # NCHW -> NHWC
    patches = _stem_patches(x)
    args = (patches,) + tuple(prep)

    vmem = pl.BlockSpec(memory_space=pltpu.MemorySpace.VMEM)      # whole-array VMEM blocks
    return pl.pallas_call(
        _fused_forward_kernel,
        out_shape=jax.ShapeDtypeStruct((x.shape[0], NUM_CLASSES), jnp.float32),
        in_specs=[vmem] * len(args),
        out_specs=vmem,
    )(*args)


# ---------------------------------------------------------------------------
# Parameters (deterministic synthetic init; shapes follow the module __init__)
# ---------------------------------------------------------------------------
def init_params(key):
    keys = iter(jax.random.split(key, 64))

    def conv_w(kh, kw, cin, cout):
        std = (2.0 / (kh * kw * cout)) ** 0.5          # kaiming fan_out, relu
        return std * jax.random.normal(next(keys), (kh, kw, cin, cout), jnp.float32)

    def bn(c):
        scale = 1.0 + 0.1 * jax.random.normal(next(keys), (c,), jnp.float32)
        bias = 0.05 * jax.random.normal(next(keys), (c,), jnp.float32)
        return scale, bias

    p = {}
    # Stem: Conv2d(3, STEM, k=7, s=2, p=3, bias=False) + BN
    p['stem_w'], p['stem_bn'] = conv_w(7, 7, IN_CHANNELS, STEM_CHANNELS), bn(STEM_CHANNELS)

    # block0: Bottleneck(in=8, bottleneck=8, out=16, stride=1, dilation=1)
    cin, cbn, cout = BODY_CHANNELS[0]
    p['b0_down_w'], p['b0_down_bn'] = conv_w(1, 1, cin, cout), bn(cout)
    p['b0_c1_w'], p['b0_c1_bn'] = conv_w(1, 1, cin, cbn), bn(cbn)
    p['b0_c2_w'], p['b0_c2_bn'] = conv_w(3, 3, cbn, cbn), bn(cbn)
    p['b0_c3_w'], p['b0_c3_bn'] = conv_w(1, 1, cbn, cout), bn(cout)

    # block1: StriderBlock(in=16, bottleneck=8, out=16)  (no downsample: in==out)
    cin, cbn, cout = BODY_CHANNELS[1]
    p['b1_c1_w'], p['b1_c1_bn'] = conv_w(1, 1, cin, cbn), bn(cbn)
    p['b1_c2_w'], p['b1_c2_bn'] = conv_w(3, 3, cbn, cbn), bn(cbn)   # conv2_weight
    p['b1_c3_w'], p['b1_c3_bn'] = conv_w(1, 1, cbn, cout), bn(cout)

    # classifier head
    p['fc_w'] = 0.05 * jax.random.normal(next(keys), (OUT_CHANNELS, NUM_CLASSES), jnp.float32)
    p['fc_b'] = 0.01 * jax.random.normal(next(keys), (NUM_CLASSES,), jnp.float32)
    return p


# ---------------------------------------------------------------------------
# Pure-XLA f32 reference (independent structure: lax.conv / reduce_window)
# ---------------------------------------------------------------------------
def _reference_forward(params, x_nchw):
    x = jnp.transpose(x_nchw, (0, 2, 3, 1))

    def conv_bn(x, w, bn, stride=(1, 1), padding=(0, 0), relu=False, residual=None):
        scale, bias = bn
        out = lax.conv_general_dilated(
            x, w, window_strides=stride,
            padding=[(padding[0], padding[0]), (padding[1], padding[1])],
            dimension_numbers=('NHWC', 'HWIO', 'NHWC'))
        out = out * scale + bias
        if residual is not None:
            out = out + residual
        if relu:
            out = jnp.maximum(out, 0.0)
        return out

    x = conv_bn(x, params['stem_w'], params['stem_bn'],
                stride=(2, 2), padding=(3, 3), relu=True)
    x = lax.reduce_window(x, -jnp.inf, lax.max,
                          (1, 3, 3, 1), (1, 2, 2, 1),
                          [(0, 0), (1, 1), (1, 1), (0, 0)])

    identity = conv_bn(x, params['b0_down_w'], params['b0_down_bn'])
    out = conv_bn(x, params['b0_c1_w'], params['b0_c1_bn'], relu=True)
    out = conv_bn(out, params['b0_c2_w'], params['b0_c2_bn'], padding=(1, 1), relu=True)
    x = conv_bn(out, params['b0_c3_w'], params['b0_c3_bn'], residual=identity, relu=True)

    identity = x
    out = conv_bn(x, params['b1_c1_w'], params['b1_c1_bn'], relu=True)
    out = conv_bn(out, params['b1_c2_w'], params['b1_c2_bn'], padding=(1, 1), relu=True)
    x = conv_bn(out, params['b1_c3_w'], params['b1_c3_bn'], residual=identity, relu=True)

    pooled = jnp.mean(x, axis=(1, 2))
    return pooled @ params['fc_w'] + params['fc_b']


# ---------------------------------------------------------------------------
if __name__ == "__main__":
    key = jax.random.PRNGKey(0)
    pkey, xkey = jax.random.split(key)
    params = init_params(pkey)
    x = jax.random.normal(xkey, (BATCH, IN_CHANNELS, IN_H, IN_W), jnp.float32)  # NCHW

    prep = prepare_inference_params(params)
    fwd = jax.jit(functools.partial(strider_classifier_forward, stride_combo=(0,)))

    logits = fwd(prep, x)
    jax.block_until_ready(logits)

    assert logits.shape == (BATCH, NUM_CLASSES)
    assert bool(jnp.all(jnp.isfinite(logits)))

    # Loose sanity check against an f32 XLA reference (kernel uses bf16 MXU
    # operands with f32 accumulation, so allow bf16-level discrepancy).
    ref = _reference_forward(params, x)
    err = float(jnp.max(jnp.abs(logits - ref)))
    tol = 0.05 + 0.05 * float(jnp.max(jnp.abs(ref)))
    assert err <= tol, f"kernel/reference mismatch: max|diff|={err:.4f} tol={tol:.4f}"

    print("KERNEL_OK")
</pallas_src>

<mosaic_0001>
module attributes {stable_mosaic.version = 11 : i64} {
  func.func @_fused_forward_kernel(%arg0: memref<128x147xbf16, #tpu.memory_space<vmem>>, %arg1: memref<147x8xbf16, #tpu.memory_space<vmem>>, %arg2: memref<1x8xf32, #tpu.memory_space<vmem>>, %arg3: memref<288x128xbf16, #tpu.memory_space<vmem>>, %arg4: memref<288x32xbf16, #tpu.memory_space<vmem>>, %arg5: memref<2x32xbf16, #tpu.memory_space<vmem>>, %arg6: memref<8x16xbf16, #tpu.memory_space<vmem>>, %arg7: memref<1x16xf32, #tpu.memory_space<vmem>>, %arg8: memref<8x8xbf16, #tpu.memory_space<vmem>>, %arg9: memref<1x8xf32, #tpu.memory_space<vmem>>, %arg10: memref<9x8x8xbf16, #tpu.memory_space<vmem>>, %arg11: memref<1x8xf32, #tpu.memory_space<vmem>>, %arg12: memref<8x16xbf16, #tpu.memory_space<vmem>>, %arg13: memref<1x16xf32, #tpu.memory_space<vmem>>, %arg14: memref<16x8xbf16, #tpu.memory_space<vmem>>, %arg15: memref<1x8xf32, #tpu.memory_space<vmem>>, %arg16: memref<9x8x8xbf16, #tpu.memory_space<vmem>>, %arg17: memref<1x8xf32, #tpu.memory_space<vmem>>, %arg18: memref<8x16xbf16, #tpu.memory_space<vmem>>, %arg19: memref<1x16xf32, #tpu.memory_space<vmem>>, %arg20: memref<16x10xbf16, #tpu.memory_space<vmem>>, %arg21: memref<1x10xf32, #tpu.memory_space<vmem>>, %arg22: memref<2x10xf32, #tpu.memory_space<vmem>>) attributes {dimension_semantics = [], scalar_prefetch = 0 : i64, scratch_operands = 0 : i64, tpu.core_type = #tpu.core_type<tc>} {
    %c0 = arith.constant 0 : index
    %c0_0 = arith.constant 0 : index
    %0 = vector.load %arg0[%c0, %c0_0] : memref<128x147xbf16, #tpu.memory_space<vmem>>, vector<128x147xbf16>
    %c0_1 = arith.constant 0 : index
    %c0_2 = arith.constant 0 : index
    %1 = vector.load %arg1[%c0_1, %c0_2] : memref<147x8xbf16, #tpu.memory_space<vmem>>, vector<147x8xbf16>
    %cst = arith.constant dense<0.000000e+00> : vector<128x8xf32>
    %2 = tpu.matmul %0, %1, %cst {dimension_numbers = #tpu.dot_dimension_numbers<[1], [0], [0], [1], [0, 0, 1, 1], [], []>} : vector<128x147xbf16>, vector<147x8xbf16>, vector<128x8xf32> -> vector<128x8xf32>
    %c0_3 = arith.constant 0 : index
    %c0_4 = arith.constant 0 : index
    %3 = vector.load %arg2[%c0_3, %c0_4] : memref<1x8xf32, #tpu.memory_space<vmem>>, vector<1x8xf32>
    %4 = vector.broadcast %3 : vector<1x8xf32> to vector<128x8xf32>
    %5 = arith.addf %2, %4 : vector<128x8xf32>
    %cst_5 = arith.constant 0.000000e+00 : f32
    %6 = vector.broadcast %cst_5 : f32 to vector<128x8xf32>
    %7 = arith.maximumf %5, %6 : vector<128x8xf32>
    %c0_6 = arith.constant 0 : index
    %c0_7 = arith.constant 0 : index
    %8 = vector.load %arg3[%c0_6, %c0_7] : memref<288x128xbf16, #tpu.memory_space<vmem>>, vector<288x128xbf16>
    %9 = arith.truncf %7 : vector<128x8xf32> to vector<128x8xbf16>
    %cst_8 = arith.constant dense<0.000000e+00> : vector<288x8xf32>
    %10 = tpu.matmul %8, %9, %cst_8 {dimension_numbers = #tpu.dot_dimension_numbers<[1], [0], [0], [1], [0, 0, 1, 1], [], []>} : vector<288x128xbf16>, vector<128x8xbf16>, vector<288x8xf32> -> vector<288x8xf32>
    %11 = vector.extract_strided_slice %10 {offsets = [0, 0], sizes = [32, 8], strides = [1, 1]} : vector<288x8xf32> to vector<32x8xf32>
    %12 = vector.extract_strided_slice %10 {offsets = [32, 0], sizes = [32, 8], strides = [1, 1]} : vector<288x8xf32> to vector<32x8xf32>
    %13 = arith.maximumf %11, %12 : vector<32x8xf32>
    %14 = vector.extract_strided_slice %10 {offsets = [64, 0], sizes = [32, 8], strides = [1, 1]} : vector<288x8xf32> to vector<32x8xf32>
    %15 = arith.maximumf %13, %14 : vector<32x8xf32>
    %16 = vector.extract_strided_slice %10 {offsets = [96, 0], sizes = [32, 8], strides = [1, 1]} : vector<288x8xf32> to vector<32x8xf32>
    %17 = arith.maximumf %15, %16 : vector<32x8xf32>
    %18 = vector.extract_strided_slice %10 {offsets = [128, 0], sizes = [32, 8], strides = [1, 1]} : vector<288x8xf32> to vector<32x8xf32>
    %19 = arith.maximumf %17, %18 : vector<32x8xf32>
    %20 = vector.extract_strided_slice %10 {offsets = [160, 0], sizes = [32, 8], strides = [1, 1]} : vector<288x8xf32> to vector<32x8xf32>
    %21 = arith.maximumf %19, %20 : vector<32x8xf32>
    %22 = vector.extract_strided_slice %10 {offsets = [192, 0], sizes = [32, 8], strides = [1, 1]} : vector<288x8xf32> to vector<32x8xf32>
    %23 = arith.maximumf %21, %22 : vector<32x8xf32>
    %24 = vector.extract_strided_slice %10 {offsets = [224, 0], sizes = [32, 8], strides = [1, 1]} : vector<288x8xf32> to vector<32x8xf32>
    %25 = arith.maximumf %23, %24 : vector<32x8xf32>
    %26 = vector.extract_strided_slice %10 {offsets = [256, 0], sizes = [32, 8], strides = [1, 1]} : vector<288x8xf32> to vector<32x8xf32>
    %27 = arith.maximumf %25, %26 : vector<32x8xf32>
    %c0_9 = arith.constant 0 : index
    %c0_10 = arith.constant 0 : index
    %28 = vector.load %arg4[%c0_9, %c0_10] : memref<288x32xbf16, #tpu.memory_space<vmem>>, vector<288x32xbf16>
    %c0_11 = arith.constant 0 : index
    %c0_12 = arith.constant 0 : index
    %29 = vector.load %arg6[%c0_11, %c0_12] : memref<8x16xbf16, #tpu.memory_space<vmem>>, vector<8x16xbf16>
    %30 = arith.truncf %27 : vector<32x8xf32> to vector<32x8xbf16>
    %cst_13 = arith.constant dense<0.000000e+00> : vector<32x16xf32>
    %31 = tpu.matmul %30, %29, %cst_13 {dimension_numbers = #tpu.dot_dimension_numbers<[1], [0], [0], [1], [0, 0, 1, 1], [], []>} : vector<32x8xbf16>, vector<8x16xbf16>, vector<32x16xf32> -> vector<32x16xf32>
    %c0_14 = arith.constant 0 : index
    %c0_15 = arith.constant 0 : index
    %32 = vector.load %arg7[%c0_14, %c0_15] : memref<1x16xf32, #tpu.memory_space<vmem>>, vector<1x16xf32>
    %33 = vector.broadcast %32 : vector<1x16xf32> to vector<32x16xf32>
    %34 = arith.addf %31, %33 : vector<32x16xf32>
    %c0_16 = arith.constant 0 : index
    %c0_17 = arith.constant 0 : index
    %35 = vector.load %arg8[%c0_16, %c0_17] : memref<8x8xbf16, #tpu.memory_space<vmem>>, vector<8x8xbf16>
    %36 = arith.truncf %27 : vector<32x8xf32> to vector<32x8xbf16>
    %cst_18 = arith.constant dense<0.000000e+00> : vector<32x8xf32>
    %37 = tpu.matmul %36, %35, %cst_18 {dimension_numbers = #tpu.dot_dimension_numbers<[1], [0], [0], [1], [0, 0, 1, 1], [], []>} : vector<32x8xbf16>, vector<8x8xbf16>, vector<32x8xf32> -> vector<32x8xf32>
    %c0_19 = arith.constant 0 : index
    %c0_20 = arith.constant 0 : index
    %38 = vector.load %arg9[%c0_19, %c0_20] : memref<1x8xf32, #tpu.memory_space<vmem>>, vector<1x8xf32>
    %39 = vector.broadcast %38 : vector<1x8xf32> to vector<32x8xf32>
    %40 = arith.addf %37, %39 : vector<32x8xf32>
    %cst_21 = arith.constant 0.000000e+00 : f32
    %41 = vector.broadcast %cst_21 : f32 to vector<32x8xf32>
    %42 = arith.maximumf %40, %41 : vector<32x8xf32>
    %43 = arith.truncf %42 : vector<32x8xf32> to vector<32x8xbf16>
    %cst_22 = arith.constant dense<0.000000e+00> : vector<288x8xf32>
    %44 = tpu.matmul %28, %43, %cst_22 {dimension_numbers = #tpu.dot_dimension_numbers<[1], [0], [0], [1], [0, 0, 1, 1], [], []>} : vector<288x32xbf16>, vector<32x8xbf16>, vector<288x8xf32> -> vector<288x8xf32>
    %45 = vector.extract_strided_slice %44 {offsets = [0, 0], sizes = [32, 8], strides = [1, 1]} : vector<288x8xf32> to vector<32x8xf32>
    %c0_23 = arith.constant 0 : index
    %c0_24 = arith.constant 0 : index
    %c0_25 = arith.constant 0 : index
    %46 = vector.load %arg10[%c0_23, %c0_24, %c0_25] : memref<9x8x8xbf16, #tpu.memory_space<vmem>>, vector<1x8x8xbf16>
    %47 = vector.shape_cast %46 : vector<1x8x8xbf16> to vector<8x8xbf16>
    %48 = arith.truncf %45 : vector<32x8xf32> to vector<32x8xbf16>
    %cst_26 = arith.constant dense<0.000000e+00> : vector<32x8xf32>
    %49 = tpu.matmul %48, %47, %cst_26 {dimension_numbers = #tpu.dot_dimension_numbers<[1], [0], [0], [1], [0, 0, 1, 1], [], []>} : vector<32x8xbf16>, vector<8x8xbf16>, vector<32x8xf32> -> vector<32x8xf32>
    %50 = vector.extract_strided_slice %44 {offsets = [32, 0], sizes = [32, 8], strides = [1, 1]} : vector<288x8xf32> to vector<32x8xf32>
    %c1 = arith.constant 1 : index
    %c0_27 = arith.constant 0 : index
    %c0_28 = arith.constant 0 : index
    %51 = vector.load %arg10[%c1, %c0_27, %c0_28] : memref<9x8x8xbf16, #tpu.memory_space<vmem>>, vector<1x8x8xbf16>
    %52 = vector.shape_cast %51 : vector<1x8x8xbf16> to vector<8x8xbf16>
    %53 = arith.truncf %50 : vector<32x8xf32> to vector<32x8xbf16>
    %cst_29 = arith.constant dense<0.000000e+00> : vector<32x8xf32>
    %54 = tpu.matmul %53, %52, %cst_29 {dimension_numbers = #tpu.dot_dimension_numbers<[1], [0], [0], [1], [0, 0, 1, 1], [], []>} : vector<32x8xbf16>, vector<8x8xbf16>, vector<32x8xf32> -> vector<32x8xf32>
    %55 = arith.addf %49, %54 : vector<32x8xf32>
    %56 = vector.extract_strided_slice %44 {offsets = [64, 0], sizes = [32, 8], strides = [1, 1]} : vector<288x8xf32> to vector<32x8xf32>
    %c2 = arith.constant 2 : index
    %c0_30 = arith.constant 0 : index
    %c0_31 = arith.constant 0 : index
    %57 = vector.load %arg10[%c2, %c0_30, %c0_31] : memref<9x8x8xbf16, #tpu.memory_space<vmem>>, vector<1x8x8xbf16>
    %58 = vector.shape_cast %57 : vector<1x8x8xbf16> to vector<8x8xbf16>
    %59 = arith.truncf %56 : vector<32x8xf32> to vector<32x8xbf16>
    %cst_32 = arith.constant dense<0.000000e+00> : vector<32x8xf32>
    %60 = tpu.matmul %59, %58, %cst_32 {dimension_numbers = #tpu.dot_dimension_numbers<[1], [0], [0], [1], [0, 0, 1, 1], [], []>} : vector<32x8xbf16>, vector<8x8xbf16>, vector<32x8xf32> -> vector<32x8xf32>
    %61 = arith.addf %55, %60 : vector<32x8xf32>
    %62 = vector.extract_strided_slice %44 {offsets = [96, 0], sizes = [32, 8], strides = [1, 1]} : vector<288x8xf32> to vector<32x8xf32>
    %c3 = arith.constant 3 : index
    %c0_33 = arith.constant 0 : index
    %c0_34 = arith.constant 0 : index
    %63 = vector.load %arg10[%c3, %c0_33, %c0_34] : memref<9x8x8xbf16, #tpu.memory_space<vmem>>, vector<1x8x8xbf16>
    %64 = vector.shape_cast %63 : vector<1x8x8xbf16> to vector<8x8xbf16>
    %65 = arith.truncf %62 : vector<32x8xf32> to vector<32x8xbf16>
    %cst_35 = arith.constant dense<0.000000e+00> : vector<32x8xf32>
    %66 = tpu.matmul %65, %64, %cst_35 {dimension_numbers = #tpu.dot_dimension_numbers<[1], [0], [0], [1], [0, 0, 1, 1], [], []>} : vector<32x8xbf16>, vector<8x8xbf16>, vector<32x8xf32> -> vector<32x8xf32>
    %67 = arith.addf %61, %66 : vector<32x8xf32>
    %68 = vector.extract_strided_slice %44 {offsets = [128, 0], sizes = [32, 8], strides = [1, 1]} : vector<288x8xf32> to vector<32x8xf32>
    %c4 = arith.constant 4 : index
    %c0_36 = arith.constant 0 : index
    %c0_37 = arith.constant 0 : index
    %69 = vector.load %arg10[%c4, %c0_36, %c0_37] : memref<9x8x8xbf16, #tpu.memory_space<vmem>>, vector<1x8x8xbf16>
    %70 = vector.shape_cast %69 : vector<1x8x8xbf16> to vector<8x8xbf16>
    %71 = arith.truncf %68 : vector<32x8xf32> to vector<32x8xbf16>
    %cst_38 = arith.constant dense<0.000000e+00> : vector<32x8xf32>
    %72 = tpu.matmul %71, %70, %cst_38 {dimension_numbers = #tpu.dot_dimension_numbers<[1], [0], [0], [1], [0, 0, 1, 1], [], []>} : vector<32x8xbf16>, vector<8x8xbf16>, vector<32x8xf32> -> vector<32x8xf32>
    %73 = arith.addf %67, %72 : vector<32x8xf32>
    %74 = vector.extract_strided_slice %44 {offsets = [160, 0], sizes = [32, 8], strides = [1, 1]} : vector<288x8xf32> to vector<32x8xf32>
    %c5 = arith.constant 5 : index
    %c0_39 = arith.constant 0 : index
    %c0_40 = arith.constant 0 : index
    %75 = vector.load %arg10[%c5, %c0_39, %c0_40] : memref<9x8x8xbf16, #tpu.memory_space<vmem>>, vector<1x8x8xbf16>
    %76 = vector.shape_cast %75 : vector<1x8x8xbf16> to vector<8x8xbf16>
    %77 = arith.truncf %74 : vector<32x8xf32> to vector<32x8xbf16>
    %cst_41 = arith.constant dense<0.000000e+00> : vector<32x8xf32>
    %78 = tpu.matmul %77, %76, %cst_41 {dimension_numbers = #tpu.dot_dimension_numbers<[1], [0], [0], [1], [0, 0, 1, 1], [], []>} : vector<32x8xbf16>, vector<8x8xbf16>, vector<32x8xf32> -> vector<32x8xf32>
    %79 = arith.addf %73, %78 : vector<32x8xf32>
    %80 = vector.extract_strided_slice %44 {offsets = [192, 0], sizes = [32, 8], strides = [1, 1]} : vector<288x8xf32> to vector<32x8xf32>
    %c6 = arith.constant 6 : index
    %c0_42 = arith.constant 0 : index
    %c0_43 = arith.constant 0 : index
    %81 = vector.load %arg10[%c6, %c0_42, %c0_43] : memref<9x8x8xbf16, #tpu.memory_space<vmem>>, vector<1x8x8xbf16>
    %82 = vector.shape_cast %81 : vector<1x8x8xbf16> to vector<8x8xbf16>
    %83 = arith.truncf %80 : vector<32x8xf32> to vector<32x8xbf16>
    %cst_44 = arith.constant dense<0.000000e+00> : vector<32x8xf32>
    %84 = tpu.matmul %83, %82, %cst_44 {dimension_numbers = #tpu.dot_dimension_numbers<[1], [0], [0], [1], [0, 0, 1, 1], [], []>} : vector<32x8xbf16>, vector<8x8xbf16>, vector<32x8xf32> -> vector<32x8xf32>
    %85 = arith.addf %79, %84 : vector<32x8xf32>
    %86 = vector.extract_strided_slice %44 {offsets = [224, 0], sizes = [32, 8], strides = [1, 1]} : vector<288x8xf32> to vector<32x8xf32>
    %c7 = arith.constant 7 : index
    %c0_45 = arith.constant 0 : index
    %c0_46 = arith.constant 0 : index
    %87 = vector.load %arg10[%c7, %c0_45, %c0_46] : memref<9x8x8xbf16, #tpu.memory_space<vmem>>, vector<1x8x8xbf16>
    %88 = vector.shape_cast %87 : vector<1x8x8xbf16> to vector<8x8xbf16>
    %89 = arith.truncf %86 : vector<32x8xf32> to vector<32x8xbf16>
    %cst_47 = arith.constant dense<0.000000e+00> : vector<32x8xf32>
    %90 = tpu.matmul %89, %88, %cst_47 {dimension_numbers = #tpu.dot_dimension_numbers<[1], [0], [0], [1], [0, 0, 1, 1], [], []>} : vector<32x8xbf16>, vector<8x8xbf16>, vector<32x8xf32> -> vector<32x8xf32>
    %91 = arith.addf %85, %90 : vector<32x8xf32>
    %92 = vector.extract_strided_slice %44 {offsets = [256, 0], sizes = [32, 8], strides = [1, 1]} : vector<288x8xf32> to vector<32x8xf32>
    %c8 = arith.constant 8 : index
    %c0_48 = arith.constant 0 : index
    %c0_49 = arith.constant 0 : index
    %93 = vector.load %arg10[%c8, %c0_48, %c0_49] : memref<9x8x8xbf16, #tpu.memory_space<vmem>>, vector<1x8x8xbf16>
    %94 = vector.shape_cast %93 : vector<1x8x8xbf16> to vector<8x8xbf16>
    %95 = arith.truncf %92 : vector<32x8xf32> to vector<32x8xbf16>
    %cst_50 = arith.constant dense<0.000000e+00> : vector<32x8xf32>
    %96 = tpu.matmul %95, %94, %cst_50 {dimension_numbers = #tpu.dot_dimension_numbers<[1], [0], [0], [1], [0, 0, 1, 1], [], []>} : vector<32x8xbf16>, vector<8x8xbf16>, vector<32x8xf32> -> vector<32x8xf32>
    %97 = arith.addf %91, %96 : vector<32x8xf32>
    %c0_51 = arith.constant 0 : index
    %c0_52 = arith.constant 0 : index
    %98 = vector.load %arg11[%c0_51, %c0_52] : memref<1x8xf32, #tpu.memory_space<vmem>>, vector<1x8xf32>
    %99 = vector.broadcast %98 : vector<1x8xf32> to vector<32x8xf32>
    %100 = arith.addf %97, %99 : vector<32x8xf32>
    %cst_53 = arith.constant 0.000000e+00 : f32
    %101 = vector.broadcast %cst_53 : f32 to vector<32x8xf32>
    %102 = arith.maximumf %100, %101 : vector<32x8xf32>
    %c0_54 = arith.constant 0 : index
    %c0_55 = arith.constant 0 : index
    %103 = vector.load %arg12[%c0_54, %c0_55] : memref<8x16xbf16, #tpu.memory_space<vmem>>, vector<8x16xbf16>
    %104 = arith.truncf %102 : vector<32x8xf32> to vector<32x8xbf16>
    %cst_56 = arith.constant dense<0.000000e+00> : vector<32x16xf32>
    %105 = tpu.matmul %104, %103, %cst_56 {dimension_numbers = #tpu.dot_dimension_numbers<[1], [0], [0], [1], [0, 0, 1, 1], [], []>} : vector<32x8xbf16>, vector<8x16xbf16>, vector<32x16xf32> -> vector<32x16xf32>
    %c0_57 = arith.constant 0 : index
    %c0_58 = arith.constant 0 : index
    %106 = vector.load %arg13[%c0_57, %c0_58] : memref<1x16xf32, #tpu.memory_space<vmem>>, vector<1x16xf32>
    %107 = vector.broadcast %106 : vector<1x16xf32> to vector<32x16xf32>
    %108 = arith.addf %105, %107 : vector<32x16xf32>
    %109 = arith.addf %108, %34 : vector<32x16xf32>
    %cst_59 = arith.constant 0.000000e+00 : f32
    %110 = vector.broadcast %cst_59 : f32 to vector<32x16xf32>
    %111 = arith.maximumf %109, %110 : vector<32x16xf32>
    %c0_60 = arith.constant 0 : index
    %c0_61 = arith.constant 0 : index
    %112 = vector.load %arg14[%c0_60, %c0_61] : memref<16x8xbf16, #tpu.memory_space<vmem>>, vector<16x8xbf16>
    %113 = arith.truncf %111 : vector<32x16xf32> to vector<32x16xbf16>
    %cst_62 = arith.constant dense<0.000000e+00> : vector<32x8xf32>
    %114 = tpu.matmul %113, %112, %cst_62 {dimension_numbers = #tpu.dot_dimension_numbers<[1], [0], [0], [1], [0, 0, 1, 1], [], []>} : vector<32x16xbf16>, vector<16x8xbf16>, vector<32x8xf32> -> vector<32x8xf32>
    %c0_63 = arith.constant 0 : index
    %c0_64 = arith.constant 0 : index
    %115 = vector.load %arg15[%c0_63, %c0_64] : memref<1x8xf32, #tpu.memory_space<vmem>>, vector<1x8xf32>
    %116 = vector.broadcast %115 : vector<1x8xf32> to vector<32x8xf32>
    %117 = arith.addf %114, %116 : vector<32x8xf32>
    %cst_65 = arith.constant 0.000000e+00 : f32
    %118 = vector.broadcast %cst_65 : f32 to vector<32x8xf32>
    %119 = arith.maximumf %117, %118 : vector<32x8xf32>
    %120 = arith.truncf %119 : vector<32x8xf32> to vector<32x8xbf16>
    %cst_66 = arith.constant dense<0.000000e+00> : vector<288x8xf32>
    %121 = tpu.matmul %28, %120, %cst_66 {dimension_numbers = #tpu.dot_dimension_numbers<[1], [0], [0], [1], [0, 0, 1, 1], [], []>} : vector<288x32xbf16>, vector<32x8xbf16>, vector<288x8xf32> -> vector<288x8xf32>
    %122 = vector.extract_strided_slice %121 {offsets = [0, 0], sizes = [32, 8], strides = [1, 1]} : vector<288x8xf32> to vector<32x8xf32>
    %c0_67 = arith.constant 0 : index
    %c0_68 = arith.constant 0 : index
    %c0_69 = arith.constant 0 : index
    %123 = vector.load %arg16[%c0_67, %c0_68, %c0_69] : memref<9x8x8xbf16, #tpu.memory_space<vmem>>, vector<1x8x8xbf16>
    %124 = vector.shape_cast %123 : vector<1x8x8xbf16> to vector<8x8xbf16>
    %125 = arith.truncf %122 : vector<32x8xf32> to vector<32x8xbf16>
    %cst_70 = arith.constant dense<0.000000e+00> : vector<32x8xf32>
    %126 = tpu.matmul %125, %124, %cst_70 {dimension_numbers = #tpu.dot_dimension_numbers<[1], [0], [0], [1], [0, 0, 1, 1], [], []>} : vector<32x8xbf16>, vector<8x8xbf16>, vector<32x8xf32> -> vector<32x8xf32>
    %127 = vector.extract_strided_slice %121 {offsets = [32, 0], sizes = [32, 8], strides = [1, 1]} : vector<288x8xf32> to vector<32x8xf32>
    %c1_71 = arith.constant 1 : index
    %c0_72 = arith.constant 0 : index
    %c0_73 = arith.constant 0 : index
    %128 = vector.load %arg16[%c1_71, %c0_72, %c0_73] : memref<9x8x8xbf16, #tpu.memory_space<vmem>>, vector<1x8x8xbf16>
    %129 = vector.shape_cast %128 : vector<1x8x8xbf16> to vector<8x8xbf16>
    %130 = arith.truncf %127 : vector<32x8xf32> to vector<32x8xbf16>
    %cst_74 = arith.constant dense<0.000000e+00> : vector<32x8xf32>
    %131 = tpu.matmul %130, %129, %cst_74 {dimension_numbers = #tpu.dot_dimension_numbers<[1], [0], [0], [1], [0, 0, 1, 1], [], []>} : vector<32x8xbf16>, vector<8x8xbf16>, vector<32x8xf32> -> vector<32x8xf32>
    %132 = arith.addf %126, %131 : vector<32x8xf32>
    %133 = vector.extract_strided_slice %121 {offsets = [64, 0], sizes = [32, 8], strides = [1, 1]} : vector<288x8xf32> to vector<32x8xf32>
    %c2_75 = arith.constant 2 : index
    %c0_76 = arith.constant 0 : index
    %c0_77 = arith.constant 0 : index
    %134 = vector.load %arg16[%c2_75, %c0_76, %c0_77] : memref<9x8x8xbf16, #tpu.memory_space<vmem>>, vector<1x8x8xbf16>
    %135 = vector.shape_cast %134 : vector<1x8x8xbf16> to vector<8x8xbf16>
    %136 = arith.truncf %133 : vector<32x8xf32> to vector<32x8xbf16>
    %cst_78 = arith.constant dense<0.000000e+00> : vector<32x8xf32>
    %137 = tpu.matmul %136, %135, %cst_78 {dimension_numbers = #tpu.dot_dimension_numbers<[1], [0], [0], [1], [0, 0, 1, 1], [], []>} : vector<32x8xbf16>, vector<8x8xbf16>, vector<32x8xf32> -> vector<32x8xf32>
    %138 = arith.addf %132, %137 : vector<32x8xf32>
    %139 = vector.extract_strided_slice %121 {offsets = [96, 0], sizes = [32, 8], strides = [1, 1]} : vector<288x8xf32> to vector<32x8xf32>
    %c3_79 = arith.constant 3 : index
    %c0_80 = arith.constant 0 : index
    %c0_81 = arith.constant 0 : index
    %140 = vector.load %arg16[%c3_79, %c0_80, %c0_81] : memref<9x8x8xbf16, #tpu.memory_space<vmem>>, vector<1x8x8xbf16>
    %141 = vector.shape_cast %140 : vector<1x8x8xbf16> to vector<8x8xbf16>
    %142 = arith.truncf %139 : vector<32x8xf32> to vector<32x8xbf16>
    %cst_82 = arith.constant dense<0.000000e+00> : vector<32x8xf32>
    %143 = tpu.matmul %142, %141, %cst_82 {dimension_numbers = #tpu.dot_dimension_numbers<[1], [0], [0], [1], [0, 0, 1, 1], [], []>} : vector<32x8xbf16>, vector<8x8xbf16>, vector<32x8xf32> -> vector<32x8xf32>
    %144 = arith.addf %138, %143 : vector<32x8xf32>
    %145 = vector.extract_strided_slice %121 {offsets = [128, 0], sizes = [32, 8], strides = [1, 1]} : vector<288x8xf32> to vector<32x8xf32>
    %c4_83 = arith.constant 4 : index
    %c0_84 = arith.constant 0 : index
    %c0_85 = arith.constant 0 : index
    %146 = vector.load %arg16[%c4_83, %c0_84, %c0_85] : memref<9x8x8xbf16, #tpu.memory_space<vmem>>, vector<1x8x8xbf16>
    %147 = vector.shape_cast %146 : vector<1x8x8xbf16> to vector<8x8xbf16>
    %148 = arith.truncf %145 : vector<32x8xf32> to vector<32x8xbf16>
    %cst_86 = arith.constant dense<0.000000e+00> : vector<32x8xf32>
    %149 = tpu.matmul %148, %147, %cst_86 {dimension_numbers = #tpu.dot_dimension_numbers<[1], [0], [0], [1], [0, 0, 1, 1], [], []>} : vector<32x8xbf16>, vector<8x8xbf16>, vector<32x8xf32> -> vector<32x8xf32>
    %150 = arith.addf %144, %149 : vector<32x8xf32>
    %151 = vector.extract_strided_slice %121 {offsets = [160, 0], sizes = [32, 8], strides = [1, 1]} : vector<288x8xf32> to vector<32x8xf32>
    %c5_87 = arith.constant 5 : index
    %c0_88 = arith.constant 0 : index
    %c0_89 = arith.constant 0 : index
    %152 = vector.load %arg16[%c5_87, %c0_88, %c0_89] : memref<9x8x8xbf16, #tpu.memory_space<vmem>>, vector<1x8x8xbf16>
    %153 = vector.shape_cast %152 : vector<1x8x8xbf16> to vector<8x8xbf16>
    %154 = arith.truncf %151 : vector<32x8xf32> to vector<32x8xbf16>
    %cst_90 = arith.constant dense<0.000000e+00> : vector<32x8xf32>
    %155 = tpu.matmul %154, %153, %cst_90 {dimension_numbers = #tpu.dot_dimension_numbers<[1], [0], [0], [1], [0, 0, 1, 1], [], []>} : vector<32x8xbf16>, vector<8x8xbf16>, vector<32x8xf32> -> vector<32x8xf32>
    %156 = arith.addf %150, %155 : vector<32x8xf32>
    %157 = vector.extract_strided_slice %121 {offsets = [192, 0], sizes = [32, 8], strides = [1, 1]} : vector<288x8xf32> to vector<32x8xf32>
    %c6_91 = arith.constant 6 : index
    %c0_92 = arith.constant 0 : index
    %c0_93 = arith.constant 0 : index
    %158 = vector.load %arg16[%c6_91, %c0_92, %c0_93] : memref<9x8x8xbf16, #tpu.memory_space<vmem>>, vector<1x8x8xbf16>
    %159 = vector.shape_cast %158 : vector<1x8x8xbf16> to vector<8x8xbf16>
    %160 = arith.truncf %157 : vector<32x8xf32> to vector<32x8xbf16>
    %cst_94 = arith.constant dense<0.000000e+00> : vector<32x8xf32>
    %161 = tpu.matmul %160, %159, %cst_94 {dimension_numbers = #tpu.dot_dimension_numbers<[1], [0], [0], [1], [0, 0, 1, 1], [], []>} : vector<32x8xbf16>, vector<8x8xbf16>, vector<32x8xf32> -> vector<32x8xf32>
    %162 = arith.addf %156, %161 : vector<32x8xf32>
    %163 = vector.extract_strided_slice %121 {offsets = [224, 0], sizes = [32, 8], strides = [1, 1]} : vector<288x8xf32> to vector<32x8xf32>
    %c7_95 = arith.constant 7 : index
    %c0_96 = arith.constant 0 : index
    %c0_97 = arith.constant 0 : index
    %164 = vector.load %arg16[%c7_95, %c0_96, %c0_97] : memref<9x8x8xbf16, #tpu.memory_space<vmem>>, vector<1x8x8xbf16>
    %165 = vector.shape_cast %164 : vector<1x8x8xbf16> to vector<8x8xbf16>
    %166 = arith.truncf %163 : vector<32x8xf32> to vector<32x8xbf16>
    %cst_98 = arith.constant dense<0.000000e+00> : vector<32x8xf32>
    %167 = tpu.matmul %166, %165, %cst_98 {dimension_numbers = #tpu.dot_dimension_numbers<[1], [0], [0], [1], [0, 0, 1, 1], [], []>} : vector<32x8xbf16>, vector<8x8xbf16>, vector<32x8xf32> -> vector<32x8xf32>
    %168 = arith.addf %162, %167 : vector<32x8xf32>
    %169 = vector.extract_strided_slice %121 {offsets = [256, 0], sizes = [32, 8], strides = [1, 1]} : vector<288x8xf32> to vector<32x8xf32>
    %c8_99 = arith.constant 8 : index
    %c0_100 = arith.constant 0 : index
    %c0_101 = arith.constant 0 : index
    %170 = vector.load %arg16[%c8_99, %c0_100, %c0_101] : memref<9x8x8xbf16, #tpu.memory_space<vmem>>, vector<1x8x8xbf16>
    %171 = vector.shape_cast %170 : vector<1x8x8xbf16> to vector<8x8xbf16>
    %172 = arith.truncf %169 : vector<32x8xf32> to vector<32x8xbf16>
    %cst_102 = arith.constant dense<0.000000e+00> : vector<32x8xf32>
    %173 = tpu.matmul %172, %171, %cst_102 {dimension_numbers = #tpu.dot_dimension_numbers<[1], [0], [0], [1], [0, 0, 1, 1], [], []>} : vector<32x8xbf16>, vector<8x8xbf16>, vector<32x8xf32> -> vector<32x8xf32>
    %174 = arith.addf %168, %173 : vector<32x8xf32>
    %c0_103 = arith.constant 0 : index
    %c0_104 = arith.constant 0 : index
    %175 = vector.load %arg17[%c0_103, %c0_104] : memref<1x8xf32, #tpu.memory_space<vmem>>, vector<1x8xf32>
    %176 = vector.broadcast %175 : vector<1x8xf32> to vector<32x8xf32>
    %177 = arith.addf %174, %176 : vector<32x8xf32>
    %cst_105 = arith.constant 0.000000e+00 : f32
    %178 = vector.broadcast %cst_105 : f32 to vector<32x8xf32>
    %179 = arith.maximumf %177, %178 : vector<32x8xf32>
    %c0_106 = arith.constant 0 : index
    %c0_107 = arith.constant 0 : index
    %180 = vector.load %arg18[%c0_106, %c0_107] : memref<8x16xbf16, #tpu.memory_space<vmem>>, vector<8x16xbf16>
    %181 = arith.truncf %179 : vector<32x8xf32> to vector<32x8xbf16>
    %cst_108 = arith.constant dense<0.000000e+00> : vector<32x16xf32>
    %182 = tpu.matmul %181, %180, %cst_108 {dimension_numbers = #tpu.dot_dimension_numbers<[1], [0], [0], [1], [0, 0, 1, 1], [], []>} : vector<32x8xbf16>, vector<8x16xbf16>, vector<32x16xf32> -> vector<32x16xf32>
    %c0_109 = arith.constant 0 : index
    %c0_110 = arith.constant 0 : index
    %183 = vector.load %arg19[%c0_109, %c0_110] : memref<1x16xf32, #tpu.memory_space<vmem>>, vector<1x16xf32>
    %184 = vector.broadcast %183 : vector<1x16xf32> to vector<32x16xf32>
    %185 = arith.addf %182, %184 : vector<32x16xf32>
    %186 = arith.addf %185, %111 : vector<32x16xf32>
    %cst_111 = arith.constant 0.000000e+00 : f32
    %187 = vector.broadcast %cst_111 : f32 to vector<32x16xf32>
    %188 = arith.maximumf %186, %187 : vector<32x16xf32>
    %c0_112 = arith.constant 0 : index
    %c0_113 = arith.constant 0 : index
    %189 = vector.load %arg5[%c0_112, %c0_113] : memref<2x32xbf16, #tpu.memory_space<vmem>>, vector<2x32xbf16>
    %190 = arith.truncf %188 : vector<32x16xf32> to vector<32x16xbf16>
    %cst_114 = arith.constant dense<0.000000e+00> : vector<2x16xf32>
    %191 = tpu.matmul %189, %190, %cst_114 {dimension_numbers = #tpu.dot_dimension_numbers<[1], [0], [0], [1], [0, 0, 1, 1], [], []>} : vector<2x32xbf16>, vector<32x16xbf16>, vector<2x16xf32> -> vector<2x16xf32>
    %c0_115 = arith.constant 0 : index
    %c0_116 = arith.constant 0 : index
    %192 = vector.load %arg20[%c0_115, %c0_116] : memref<16x10xbf16, #tpu.memory_space<vmem>>, vector<16x10xbf16>
    %193 = arith.truncf %191 : vector<2x16xf32> to vector<2x16xbf16>
    %cst_117 = arith.constant dense<0.000000e+00> : vector<2x10xf32>
    %194 = tpu.matmul %193, %192, %cst_117 {dimension_numbers = #tpu.dot_dimension_numbers<[1], [0], [0], [1], [0, 0, 1, 1], [], []>} : vector<2x16xbf16>, vector<16x10xbf16>, vector<2x10xf32> -> vector<2x10xf32>
    %c0_118 = arith.constant 0 : index
    %c0_119 = arith.constant 0 : index
    %195 = vector.load %arg21[%c0_118, %c0_119] : memref<1x10xf32, #tpu.memory_space<vmem>>, vector<1x10xf32>
    %196 = vector.broadcast %195 : vector<1x10xf32> to vector<2x10xf32>
    %197 = arith.addf %194, %196 : vector<2x10xf32>
    %c0_120 = arith.constant 0 : index
    %c0_121 = arith.constant 0 : index
    %198 = vector.load %arg22[%c0_120, %c0_121] : memref<2x10xf32, #tpu.memory_space<vmem>>, vector<2x10xf32>
    tpu.vector_store %arg22[%c0_120, %c0_121], %197 {strides = array<i32>} : memref<2x10xf32, #tpu.memory_space<vmem>>, vector<2x10xf32>,
    return
  }
}

</mosaic_0001>

<bundles_post_ra>
// kernel: strider_classifier_forward.1
= control target key start
LH: loop header
LB: loop body
LE: loop exit
PB: predicated region body
PF: predicated region fallthrough
CT: control target
= control target key end

     0   :  { %s4384_s0 = inlined_call_operand.vmem [shape: bf16[128,147], index: 0, kind: input, shape index: {}]   ;;  %s4385_s1 = inlined_call_operand.vmem [shape: bf16[147,8], index: 1, kind: input, shape index: {}]   ;;  %s4386_s2 = inlined_call_operand.vmem [shape: f32[1,8], index: 2, kind: input, shape index: {}]   ;;  %s4387_s3 = inlined_call_operand.vmem [shape: bf16[288,128], index: 3, kind: input, shape index: {}]   ;;  %s4388_s4 = inlined_call_operand.vmem [shape: bf16[288,32], index: 4, kind: input, shape index: {}]   ;;  %s4389_s5 = inlined_call_operand.vmem [shape: bf16[2,32], index: 5, kind: input, shape index: {}]   ;;  %s4390_s6 = inlined_call_operand.vmem [shape: bf16[8,16], index: 6, kind: input, shape index: {}]   ;;  %s4391_s7 = inlined_call_operand.vmem [shape: f32[1,16], index: 7, kind: input, shape index: {}]   ;;  %s4392_s8 = inlined_call_operand.vmem [shape: bf16[8,8], index: 8, kind: input, shape index: {}]   ;;  %s4393_s9 = inlined_call_operand.vmem [shape: f32[1,8], index: 9, kind: input, shape index: {}]   ;;  %s4394_s10 = inlined_call_operand.vmem [shape: bf16[9,8,8], index: 10, kind: input, shape index: {}]   ;;  %s4395_s11 = inlined_call_operand.vmem [shape: f32[1,8], index: 11, kind: input, shape index: {}]   ;;  %s4396_s12 = inlined_call_operand.vmem [shape: bf16[8,16], index: 12, kind: input, shape index: {}]   ;;  %s4397_s13 = inlined_call_operand.vmem [shape: f32[1,16], index: 13, kind: input, shape index: {}]   ;;  %s4398_s14 = inlined_call_operand.vmem [shape: bf16[16,8], index: 14, kind: input, shape index: {}]   ;;  %s4399_s15 = inlined_call_operand.vmem [shape: f32[1,8], index: 15, kind: input, shape index: {}]   ;;  %s4400_s16 = inlined_call_operand.vmem [shape: bf16[9,8,8], index: 16, kind: input, shape index: {}]   ;;  %s4401_s17 = inlined_call_operand.vmem [shape: f32[1,8], index: 17, kind: input, shape index: {}]   ;;  %s4402_s18 = inlined_call_operand.vmem [shape: bf16[8,16], index: 18, kind: input, shape index: {}]   ;;  %s4403_s19 = inlined_call_operand.vmem [shape: f32[1,16], index: 19, kind: input, shape index: {}]   ;;  %s4404_s20 = inlined_call_operand.vmem [shape: bf16[16,10], index: 20, kind: input, shape index: {}]   ;;  %s4405_s21 = inlined_call_operand.vmem [shape: f32[1,10], index: 21, kind: input, shape index: {}]   ;;  %s4406_s22 = inlined_call_operand.hbm [shape: f32[2,10], index: 22, kind: output, shape index: {}]  }
   0x1   :  { %4416 = sst [smem:[#allocation10_spill]] %s4384_s0 }
   0x2   :  { %4417 = sst [smem:[#allocation11_spill]] %s4385_s1 }
   0x3   :  { %4418 = sst [smem:[#allocation12_spill]] %s4386_s2 }
   0x4   :  { %4419 = sst [smem:[#allocation13_spill]] %s4387_s3 }
   0x5   :  { %4420 = sst [smem:[#allocation14_spill]] %s4388_s4 }
   0x6   :  { %4421 = sst [smem:[#allocation15_spill]] %s4389_s5 }
   0x7   :  { %4422 = sst [smem:[#allocation16_spill]] %s4390_s6 }
   0x8   :  { %s4423_s29 = sld [smem:[#allocation11_spill]]  ;;  %v3699_v1 = vmov 0   ;;  %vm244_vm0 = vcmask 154624   ;;  %vm269_vm1 = vcmask 1040384   ;;  %vm270_vm2 = vcmask 1041408  }
   0x9   :  { %276 = vmatprep.subr.bf16.mxu0 %v3699_v1  ;;  %s4424_s25 = sld [smem:[#allocation10_spill]]  ;;  %v3700_v7 = vmov 65535  }
   0xa   :  { %v271_v8 = vsel %vm269_vm1, 4294967295, %v3700_v7 }
   0xb   :  { %v272_v11 = vsel %vm270_vm2, %v271_v8, 0 }
   0xe   :  { %v3605_v0 = vld [vmem:[%s4423_s29 + $0x38] sm:$0xff]   ;;  %v3606_v2 = vld [vmem:[%s4423_s29 + $0x30] sm:$0xff]   ;;  %v3607_v3 = vld [vmem:[%s4423_s29 + $0x28] sm:$0xff]  }
   0xf   :  { %277 = vmatpush1.bf16.msra.mxu0 %v3605_v0  ;;  %v3608_v4 = vld [vmem:[%s4423_s29 + $0x20] sm:$0xff]   ;;  %v3609_v6 = vld [vmem:[%s4423_s29 + $0x18] sm:$0xff]   ;;  %v3610_v9 = vld [vmem:[%s4423_s29 + $0x10] sm:$0xff]  }
  0x10   :  { %278 = vmatprep.subr.bf16.mxu0 %v3699_v1  ;;  %v3617_v5 = vld [vmem:[%s4424_s25 + $0x4] ss:$8 sps:$4 sm:$0xff]   ;;  %v3613_v13 = vld [vmem:[%s4423_s29 + $0x48] ss:$0 sps:$4 sm:$0x33]  }
  0x11   :  { %3000 = vmatprep.mubr.msk.bf16.mxu0 %vm244_vm0, %v3617_v5  ;;  %v3611_v10 = vld [vmem:[%s4423_s29 + $0x8] sm:$0xff]   ;;  %v3612_v12 = vld [vmem:[%s4423_s29] sm:$0xff]   ;;  %v274_v14 = vand.u32 %v3613_v13, %v272_v11  ;;  %v3618_v17 = vld [vmem:[%s4424_s25 + $0x14] ss:$8 sps:$4 sm:$0xff]  }
  0x12   :  { %v3614_v15 = vld [vmem:[%s4423_s29 + $0x40] sm:$0xff]   ;;  %v3620_v18 = vld [vmem:[%s4424_s25 + $0x10] ss:$8 sps:$4 sm:$0xff]  }
  0x13   :  { %279 = vmatpush1.bf16.msra.mxu0 %v3606_v2  ;;  %v3615_v16 = vld [vmem:[%s4424_s25] ss:$8 sps:$4 sm:$0xff]   ;;  %v3621_v19 = vld [vmem:[%s4424_s25 + $0x24] ss:$8 sps:$4 sm:$0xff]  }
  0x14   :  { %280 = vmatprep.subr.bf16.mxu0 %v3699_v1 }
  0x17   :  { %281 = vmatpush1.bf16.msra.mxu0 %v3607_v3 }
  0x18   :  { %282 = vmatprep.subr.bf16.mxu0 %v3699_v1 }
  0x1b   :  { %283 = vmatpush1.bf16.msra.mxu0 %v3608_v4 }
  0x1c   :  { %284 = vmatprep.subr.bf16.mxu0 %v3699_v1 }
  0x1f   :  { %285 = vmatpush1.bf16.msra.mxu0 %v3609_v6 }
  0x20   :  { %286 = vmatprep.subr.bf16.mxu0 %v3699_v1 }
  0x23   :  { %287 = vmatpush1.bf16.msra.mxu0 %v3610_v9 }
  0x24   :  { %288 = vmatprep.subr.bf16.mxu0 %v3699_v1 }
  0x27   :  { %289 = vmatpush1.bf16.msra.mxu0 %v3611_v10 }
  0x28   :  { %290 = vmatprep.subr.bf16.mxu0 %v3699_v1 }
  0x2b   :  { %291 = vmatpush1.bf16.msra.mxu0 %v3612_v12 }
  0x2c   :  { %304 = vmatprep.subr.bf16.mxu0 %v3699_v1 }
  0x2f   :  { %305 = vmatpush2.bf16.msra.mxu0 %v274_v14 }
  0x30   :  { %306 = vmatprep.subr.bf16.mxu0 %v3699_v1 }
  0x33   :  { %307 = vmatpush2.bf16.msra.mxu0 %v3614_v15 }
  0x36   :  { %309 = vmatmul.mubr.bf16.vlgmr.msra.gmra.mxu0 %v3615_v16 }
  0x37   :  { %3001 = vmatprep.mubr.msk.bf16.mxu0 %vm244_vm0, %v3618_v17 }
  0x38   :  { %27 = vsyncpa [#allocation3], 0  ;;  %v3623_v20 = vld [vmem:[%s4424_s25 + $0x20] ss:$8 sps:$4 sm:$0xff]   ;;  %v3624_v21 = vld [vmem:[%s4424_s25 + $0x34] ss:$8 sps:$4 sm:$0xff]  }
  0x39   :  { %v3626_v22 = vld [vmem:[%s4424_s25 + $0x30] ss:$8 sps:$4 sm:$0xff]   ;;  %v3627_v23 = vld [vmem:[%s4424_s25 + $0x44] ss:$8 sps:$4 sm:$0xff]   ;;  %v3629_v24 = vld [vmem:[%s4424_s25 + $0x40] ss:$8 sps:$4 sm:$0xff]  }
  0x3a   :  { %v3630_v25 = vld [vmem:[%s4424_s25 + $0x54] ss:$8 sps:$4 sm:$0xff]   ;;  %v3632_v26 = vld [vmem:[%s4424_s25 + $0x50] ss:$8 sps:$4 sm:$0xff]   ;;  %v3633_v27 = vld [vmem:[%s4424_s25 + $0x64] ss:$8 sps:$4 sm:$0xff]  }
  0x3b   :  { %v3635_v28 = vld [vmem:[%s4424_s25 + $0x60] ss:$8 sps:$4 sm:$0xff]   ;;  %v3636_v29 = vld [vmem:[%s4424_s25 + $0x74] ss:$8 sps:$4 sm:$0xff]   ;;  %v3638_v30 = vld [vmem:[%s4424_s25 + $0x70] ss:$8 sps:$4 sm:$0xff]  }
  0x3c   :  { %s4425_s3 = sld [smem:[#allocation13_spill]]  ;;  %vm803_vm3 = vcmask 1043456   ;;  %vm796_vm4 = vcmask 64512   ;;  %vm1012_vm5 = vcmask 261120   ;;  %vm1937_vm6 = vcmask 130048   ;;  %s3703_s26 = smov [#allocation2]  }
  0x3d   :  { %s4426_s29 = sld [smem:[#allocation12_spill]]  ;;  %vm3702_vm7 = vmmov 0   ;;  %s2965_s2 = sshll.u32 %s3703_s26, 4  ;;  %vm2957_vm8 = vcmask 74752   ;;  %s2966_s2 = int_to_ptr.vmem [resolvable:$true] %s2965_s2 }
  0x3e   :  { %317 = vmatmul.mubr.bf16.gmra.mxu0 %v3620_v18  ;;  %s4427_s27 = sld [smem:[#allocation16_spill]]  ;;  %p3682_p1 = scmp.lt.s32.totalorder %s2966_s2, %s2966_s2 }
  0x3f   :  { %3002 = vmatprep.mubr.msk.bf16.mxu0 %vm244_vm0, %v3621_v19  ;;  %s4428_s28 = sld [smem:[#allocation14_spill]] }
  0x42   :  { %v3639_v31 = vld [vmem:[%s4425_s3] sm:$0xff]  }
  0x43   :  { %3310 = vmatprep.mubr.bf16.mxu1 %v3639_v31  ;;  %v3911_v32 = vld [vmem:[%s4426_s29] ss:$0 sm:$0xff] }
  0x46   :  { %325 = vmatmul.mubr.bf16.gmra.mxu0 %v3623_v20 }
  0x47   :  { %3003 = vmatprep.mubr.msk.bf16.mxu0 %vm244_vm0, %v3624_v21 }
  0x4e   :  { %333 = vmatmul.mubr.bf16.gmra.mxu0 %v3626_v22 }
  0x4f   :  { %3004 = vmatprep.mubr.msk.bf16.mxu0 %vm244_vm0, %v3627_v23 }
  0x56   :  { %341 = vmatmul.mubr.bf16.gmra.mxu0 %v3629_v24 }
  0x57   :  { %3005 = vmatprep.mubr.msk.bf16.mxu0 %vm244_vm0, %v3630_v25 }
  0x5e   :  { %349 = vmatmul.mubr.bf16.gmra.mxu0 %v3632_v26 }
  0x5f   :  { %3006 = vmatprep.mubr.msk.bf16.mxu0 %vm244_vm0, %v3633_v27 }
  0x66   :  { %357 = vmatmul.mubr.bf16.gmra.mxu0 %v3635_v28 }
  0x67   :  { %3007 = vmatprep.mubr.msk.bf16.mxu0 %vm244_vm0, %v3636_v29 }
  0x6e   :  { %365 = vmatmul.mubr.bf16.gmra.mxu0 %v3638_v30 }
  0xf6   :  { %v310_v33 = vpop.f32.mrf.mxu0 }
  0xf7   :  { %v311_v35 = vadd.f32 %v3911_v32, %v310_v33 }
  0xf8   :  { %v312_v34 = vpop.f32.mrf.mxu0 }
  0xf9   :  { %v373_v39 = vmax.f32 %v311_v35, 0.0 }
  0xfa   :  { %v313_v36 = vpop.f32.mrf.mxu0 }
  0xfb   :  { %v314_v37 = vadd.f32 %v3911_v32, %v313_v36 }
  0xfc   :  { %v315_v38 = vpop.f32.mrf.mxu0 }
  0xfd   :  { %v374_v40 = vmax.f32 %v314_v37, 0.0 }
  0xfe   :  { %v318_v41 = vpop.f32.mrf.mxu0 }
  0xff   :  { %v3915_v42 = vpack.c.bf16 %v374_v40, %v373_v39  ;;  %v319_v44 = vadd.f32 %v3911_v32, %v318_v41 }
 0x100   :  { %v320_v43 = vpop.f32.mrf.mxu0 }
 0x101   :  { %v375_v48 = vmax.f32 %v319_v44, 0.0  ;;  %v3641_v43 = vld [vmem:[%s4425_s3 + $0x10] sm:$0xff]   ;;  %v3642_v44 = vld [vmem:[%s4425_s3 + $0x18] sm:$0xff]  }
 0x102   :  { %v321_v45 = vpop.f32.mrf.mxu0 }
 0x103   :  { %v322_v46 = vadd.f32 %v3911_v32, %v321_v45  ;;  %v3643_v45 = vld [vmem:[%s4425_s3 + $0x20] sm:$0xff]  }
 0x104   :  { %v323_v47 = vpop.f32.mrf.mxu0 }
 0x105   :  { %v376_v49 = vmax.f32 %v322_v46, 0.0  ;;  %v3645_v46 = vld [vmem:[%s4425_s3 + $0x30] sm:$0xff]   ;;  %v3646_v47 = vld [vmem:[%s4425_s3 + $0x38] sm:$0xff]  }
 0x106   :  { %v326_v50 = vpop.f32.mrf.mxu0 }
 0x107   :  { %v3919_v51 = vpack.c.bf16 %v376_v49, %v375_v48  ;;  %v327_v36 = vadd.f32 %v3911_v32, %v326_v50  ;;  %v3647_v48 = vld [vmem:[%s4425_s3 + $0x40] sm:$0xff]   ;;  %v3648_v49 = vld [vmem:[%s4425_s3 + $0x48] sm:$0xff]   ;;  %v3649_v50 = vld [vmem:[%s4425_s3 + $0x50] sm:$0xff]  }
 0x108   :  { %v328_v52 = vpop.f32.mrf.mxu0 }
 0x109   :  { %v377_v40 = vmax.f32 %v327_v36, 0.0  ;;  %v3651_v52 = vld [vmem:[%s4425_s3 + $0x60] sm:$0xff]  }
 0x10a   :  { %v329_v53 = vpop.f32.mrf.mxu0 }
 0x10b   :  { %v330_v33 = vadd.f32 %v3911_v32, %v329_v53  ;;  %v3652_v53 = vld [vmem:[%s4425_s3 + $0x68] sm:$0xff]  }
 0x10c   :  { %v331_v54 = vpop.f32.mrf.mxu0 }
 0x10d   :  { %v378_v38 = vmax.f32 %v330_v33, 0.0  ;;  %v3653_v54 = vld [vmem:[%s4425_s3 + $0x70] sm:$0xff]  }
 0x10e   :  { %v334_v55 = vpop.f32.mrf.mxu0 }
 0x10f   :  { %v335_v30 = vadd.f32 %v3911_v32, %v334_v55  ;;  %v427_v41 = vpack.c.bf16 %v378_v38, %v377_v40  ;;  %v3654_v55 = vld [vmem:[%s4425_s3 + $0x78] sm:$0xff]  }
 0x110   :  { %v336_v56 = vpop.f32.mrf.mxu0 }
 0x111   :  { %v379_v37 = vmax.f32 %v335_v30, 0.0  ;;  %v3655_v56 = vld [vmem:[%s4425_s3 + $0x80] sm:$0xff]  }
 0x112   :  { %v337_v57 = vpop.f32.mrf.mxu0 }
 0x113   :  { %v338_v27 = vadd.f32 %v3911_v32, %v337_v57  ;;  %v3656_v57 = vld [vmem:[%s4425_s3 + $0x88] sm:$0xff]  }
 0x114   :  { %v339_v58 = vpop.f32.mrf.mxu0 }
 0x115   :  { %v380_v34 = vmax.f32 %v338_v27, 0.0  ;;  %v856_v58 = vld [vmem:[%s4392_s8] sm:$0xf] }
 0x116   :  { %v342_v59 = vpop.f32.mrf.mxu0 }
 0x117   :  { %v343_v25 = vadd.f32 %v3911_v32, %v342_v59  ;;  %v428_v39 = vpack.c.bf16 %v380_v34, %v379_v37  ;;  %v865_v59 = vsel %vm803_vm3, %v856_v58, 0 }
 0x118   :  { %v344_v60 = vpop.f32.mrf.mxu0 }
 0x119   :  { %v381_v31 = vmax.f32 %v343_v25, 0.0  ;;  %v786_v60 = vld [vmem:[%s4427_s27] sm:$0xf]  ;;  %s3677_s27 = scalar_lea.vmem %s2966_s2, 32 }
 0x11a   :  { %v345_v61 = vpop.f32.mrf.mxu0  ;;  %3578 = vmatprep.subr.msk.bf16.mxu0 %vm803_vm3, %v786_v60  ;;  %p3678_p0 = scmp.ne.s32.totalorder %s2966_s2, %s3677_s27  ;;  %p3683_p2 = scmp.lt.s32.totalorder %s3677_s27, %s3677_s27 }
 0x11b   :  { %v346_v22 = vadd.f32 %v3911_v32, %v345_v61  ;;  %v805_v61 = vsel %vm803_vm3, %v786_v60, 0 }
 0x11c   :  { %v347_v62 = vpop.f32.mrf.mxu0  ;;  %3347 = vmatpush3.bf16.msra.mxu0 %v805_v61  ;;  %p3684_p3 = por %p3683_p2, %p3682_p1 }
 0x11d   :  { %v382_v28 = vmax.f32 %v346_v22, 0.0 }
 0x11e   :  { %v350_v63 = vpop.f32.mrf.mxu0  ;;  %p3685_p4 = pnand %p3684_p3, %p3678_p0 }
 0x11f   :  { %v351_v19 = vadd.f32 %v3911_v32, %v350_v63  ;;  %v429_v35 = vpack.c.bf16 %v382_v28, %v381_v31 }
 0x120   :  { %v352_v0 = vpop.f32.mrf.mxu0 }
 0x121   :  { %v383_v26 = vmax.f32 %v351_v19, 0.0 }
 0x122   :  { %v353_v1 = vpop.f32.mrf.mxu0 }
 0x123   :  { %v354_v15 = vadd.f32 %v3911_v32, %v353_v1 }
 0x124   :  { %v355_v2 = vpop.f32.mrf.mxu0 }
 0x125   :  { %v384_v23 = vmax.f32 %v354_v15, 0.0 }
 0x126   :  { %v358_v3 = vpop.f32.mrf.mxu0 }
 0x127   :  { %v359_v12 = vadd.f32 %v3911_v32, %v358_v3  ;;  %v430_v29 = vpack.c.bf16 %v384_v23, %v383_v26 }
 0x128   :  { %v360_v4 = vpop.f32.mrf.mxu0 }
 0x129   :  { %v385_v20 = vmax.f32 %v359_v12, 0.0 }
 0x12a   :  { %v361_v5 = vpop.f32.mrf.mxu0 }
 0x12b   :  { %v362_v9 = vadd.f32 %v3911_v32, %v361_v5 }
 0x12c   :  { %v363_v6 = vpop.f32.mrf.mxu0 }
 0x12d   :  { %v386_v16 = vmax.f32 %v362_v9, 0.0 }
 0x12e   :  { %v366_v7 = vpop.f32.mrf.mxu0 }
 0x12f   :  { %v367_v10 = vadd.f32 %v3911_v32, %v366_v7  ;;  %v431_v24 = vpack.c.bf16 %v386_v16, %v385_v20 }
 0x130   :  { %v368_v8 = vpop.f32.mrf.mxu0 }
 0x131   :  { %v387_v17 = vmax.f32 %v367_v10, 0.0 }
 0x132   :  { %v369_v11 = vpop.f32.mrf.mxu0 }
 0x133   :  { %v370_v13 = vadd.f32 %v3911_v32, %v369_v11  ;;  %v3640_v32 = vld [vmem:[%s4425_s3 + $0x8] sm:$0xff]  }
 0x134   :  { %v371_v14 = vpop.f32.mrf.mxu0 }
 0x135   :  { %v388_v18 = vmax.f32 %v370_v13, 0.0 }
 0x137   :  { %v432_v21 = vpack.c.bf16 %v388_v18, %v387_v17 }
 0x139   :  { %3294 = vmatprep.subr.bf16.mxu1 %v432_v21 }
 0x13a   :  { %3295 = vmatpush3.bf16.msra.mxu1 %v432_v21 }
 0x13b   :  { %3296 = vmatprep.subr.bf16.mxu1 %v431_v24 }
 0x13e   :  { %3297 = vmatpush3.bf16.msra.mxu1 %v431_v24 }
 0x13f   :  { %3298 = vmatprep.subr.bf16.mxu1 %v430_v29 }
 0x142   :  { %3299 = vmatpush3.bf16.msra.mxu1 %v430_v29 }
 0x143   :  { %3300 = vmatprep.subr.bf16.mxu1 %v429_v35 }
 0x146   :  { %3301 = vmatpush3.bf16.msra.mxu1 %v429_v35 }
 0x147   :  { %3302 = vmatprep.subr.bf16.mxu1 %v428_v39 }
 0x14a   :  { %3303 = vmatpush3.bf16.msra.mxu1 %v428_v39 }
 0x14b   :  { %3304 = vmatprep.subr.bf16.mxu1 %v427_v41 }
 0x14e   :  { %3305 = vmatpush3.bf16.msra.mxu1 %v427_v41 }
 0x14f   :  { %3306 = vmatprep.subr.bf16.mxu1 %v3919_v51 }
 0x152   :  { %3307 = vmatpush3.bf16.msra.mxu1 %v3919_v51  ;;  %v3650_v51 = vld [vmem:[%s4425_s3 + $0x58] sm:$0xff]  }
 0x153   :  { %3308 = vmatprep.subr.bf16.mxu1 %v3915_v42 }
 0x156   :  { %3309 = vmatpush3.bf16.msra.mxu1 %v3915_v42  ;;  %v3644_v42 = vld [vmem:[%s4425_s3 + $0x28] sm:$0xff]  }
 0x157   :  { %3579 = vmatprep.subr.msk.bf16.mxu1 %vm803_vm3, %v856_v58 }
 0x159   :  { %3311 = vmatmul.mubr.bf16.vlgmr.msra.gmra.mxu1 %v3640_v32 }
 0x15a   :  { %3314 = vmatprep.mubr.bf16.mxu1 %v3641_v43  ;;  %3353 = vmatpush3.bf16.msra.mxu1 %v865_v59 }
 0x161   :  { %3315 = vmatmul.mubr.bf16.gmra.mxu1 %v3642_v44 }
 0x162   :  { %3318 = vmatprep.mubr.bf16.mxu1 %v3643_v45 }
 0x169   :  { %3319 = vmatmul.mubr.bf16.gmra.mxu1 %v3644_v42 }
 0x16a   :  { %3322 = vmatprep.mubr.bf16.mxu1 %v3645_v46 }
 0x171   :  { %3323 = vmatmul.mubr.bf16.gmra.mxu1 %v3646_v47 }
 0x172   :  { %3326 = vmatprep.mubr.bf16.mxu1 %v3647_v48 }
 0x179   :  { %3327 = vmatmul.mubr.bf16.gmra.mxu1 %v3648_v49 }
 0x17a   :  { %3330 = vmatprep.mubr.bf16.mxu1 %v3649_v50 }
 0x181   :  { %3331 = vmatmul.mubr.bf16.gmra.mxu1 %v3650_v51 }
 0x182   :  { %3334 = vmatprep.mubr.bf16.mxu1 %v3651_v52 }
 0x189   :  { %3335 = vmatmul.mubr.bf16.gmra.mxu1 %v3652_v53 }
 0x18a   :  { %3338 = vmatprep.mubr.bf16.mxu1 %v3653_v54 }
 0x191   :  { %3339 = vmatmul.mubr.bf16.gmra.mxu1 %v3654_v55 }
 0x192   :  { %3342 = vmatprep.mubr.bf16.mxu1 %v3655_v56 }
 0x199   :  { %3343 = vmatmul.mubr.bf16.gmra.mxu1 %v3656_v57 }
 0x219   :  { %v3312_v62 = vpop.f32.mrf.mxu1 }
 0x21b   :  { %v575_v63 = vpop.f32.mrf.mxu1 }
 0x21d   :  { %v3313_v0 = vpop.f32.mrf.mxu1 }
 0x21f   :  { %v578_v1 = vpop.f32.mrf.mxu1 }
 0x221   :  { %v3316_v2 = vpop.f32.mrf.mxu1 }
 0x222   :  { %v720_v30 = vmax.f32 %v3312_v62, %v3316_v2 }
 0x223   :  { %v591_v3 = vpop.f32.mrf.mxu1 }
 0x224   :  { %v718_v28 = vmax.f32 %v575_v63, %v591_v3 }
 0x225   :  { %v3317_v4 = vpop.f32.mrf.mxu1 }
 0x226   :  { %v721_v26 = vmax.f32 %v3313_v0, %v3317_v4  ;;  %v4005_v4 = vld [vmem:[%s4428_s28] sm:$0xff]  }
 0x227   :  { %v594_v5 = vpop.f32.mrf.mxu1 }
 0x228   :  { %v719_v29 = vmax.f32 %v578_v1, %v594_v5 }
 0x229   :  { %v3320_v6 = vpop.f32.mrf.mxu1 }
 0x22a   :  { %v724_v36 = vmax.f32 %v720_v30, %v3320_v6  ;;  %v3029_v6 = vld [vmem:[%s4393_s9] ss:$0 sm:$0xff]  ;;  %v4085_v30 = vld [vmem:[%s4428_s28 + $0x58] sm:$0xff]  }
 0x22b   :  { %v607_v7 = vpop.f32.mrf.mxu1 }
 0x22c   :  { %v722_v34 = vmax.f32 %v718_v28, %v607_v7  ;;  %v4071_v28 = vld [vmem:[%s4428_s28 + $0x48] sm:$0xff]  }
 0x22d   :  { %v3321_v8 = vpop.f32.mrf.mxu1 }
 0x22e   :  { %v725_v31 = vmax.f32 %v721_v26, %v3321_v8  ;;  %v4057_v26 = vld [vmem:[%s4428_s28 + $0x38] sm:$0xff]  }
 0x22f   :  { %v610_v9 = vpop.f32.mrf.mxu1 }
 0x230   :  { %v723_v35 = vmax.f32 %v719_v29, %v610_v9  ;;  %v4076_v29 = vld [vmem:[%s4428_s28 + $0x50] sm:$0xff]  }
 0x231   :  { %v3324_v10 = vpop.f32.mrf.mxu1 }
 0x232   :  { %v728_v41 = vmax.f32 %v724_v36, %v3324_v10  ;;  %v4118_v36 = vld [vmem:[%s4428_s28 + $0x80] sm:$0xff]  }
 0x233   :  { %v623_v11 = vpop.f32.mrf.mxu1  ;;  %4432 = vst [vmem:[#allocation8_spill] sm:$0xff] %v4118_v36 }
 0x234   :  { %v726_v39 = vmax.f32 %v722_v34, %v623_v11  ;;  %v4104_v34 = vld [vmem:[%s4428_s28 + $0x70] sm:$0xff]  }
 0x235   :  { %v3325_v12 = vpop.f32.mrf.mxu1  ;;  %4430 = vst [vmem:[#allocation6_spill] sm:$0xff] %v4104_v34 }
 0x236   :  { %v729_v37 = vmax.f32 %v725_v31, %v3325_v12  ;;  %v4090_v31 = vld [vmem:[%s4428_s28 + $0x60] sm:$0xff]  }
 0x237   :  { %v626_v13 = vpop.f32.mrf.mxu1 }
 0x238   :  { %v727_v40 = vmax.f32 %v723_v35, %v626_v13  ;;  %v4113_v35 = vld [vmem:[%s4428_s28 + $0x78] sm:$0xff]  }
 0x239   :  { %v3328_v14 = vpop.f32.mrf.mxu1  ;;  %4431 = vst [vmem:[#allocation7_spill] sm:$0xff] %v4113_v35 }
 0x23a   :  { %v732_v42 = vmax.f32 %v728_v41, %v3328_v14 }
 0x23b   :  { %v639_v15 = vpop.f32.mrf.mxu1 }
 0x23c   :  { %v730_v44 = vmax.f32 %v726_v39, %v639_v15 }
 0x23d   :  { %v3329_v16 = vpop.f32.mrf.mxu1 }
 0x23e   :  { %v733_v32 = vmax.f32 %v729_v37, %v3329_v16  ;;  %v4127_v37 = vld [vmem:[%s4428_s28 + $0x88] sm:$0xff]  }
 0x23f   :  { %v642_v17 = vpop.f32.mrf.mxu1  ;;  %4433 = vst [vmem:[#allocation9_spill] sm:$0xff] %v4127_v37 }
 0x240   :  { %v731_v45 = vmax.f32 %v727_v40, %v642_v17  ;;  %v1244_v40 = vld [vmem:[%s4394_s10] sm:$0xf] }
 0x241   :  { %v3332_v18 = vpop.f32.mrf.mxu1 }
 0x242   :  { %v736_v50 = vmax.f32 %v732_v42, %v3332_v18 }
 0x243   :  { %v655_v19 = vpop.f32.mrf.mxu1 }
 0x244   :  { %v734_v48 = vmax.f32 %v730_v44, %v655_v19 }
 0x245   :  { %v3333_v20 = vpop.f32.mrf.mxu1 }
 0x246   :  { %v737_v46 = vmax.f32 %v733_v32, %v3333_v20  ;;  %v4015_v20 = vld [vmem:[%s4428_s28 + $0x8] sm:$0xff]  }
 0x247   :  { %v658_v21 = vpop.f32.mrf.mxu1 }
 0x248   :  { %v735_v49 = vmax.f32 %v731_v45, %v658_v21  ;;  %v4020_v21 = vld [vmem:[%s4428_s28 + $0x10] sm:$0xff]  }
 0x249   :  { %v3336_v22 = vpop.f32.mrf.mxu1 }
 0x24a   :  { %v740_v55 = vmax.f32 %v736_v50, %v3336_v22  ;;  %v4029_v22 = vld [vmem:[%s4428_s28 + $0x18] sm:$0xff]  }
 0x24b   :  { %v671_v23 = vpop.f32.mrf.mxu1 }
 0x24c   :  { %v738_v53 = vmax.f32 %v734_v48, %v671_v23  ;;  %v4034_v23 = vld [vmem:[%s4428_s28 + $0x20] sm:$0xff]  }
 0x24d   :  { %v3337_v24 = vpop.f32.mrf.mxu1 }
 0x24e   :  { %v741_v51 = vmax.f32 %v737_v46, %v3337_v24  ;;  %v4043_v24 = vld [vmem:[%s4428_s28 + $0x28] sm:$0xff]  }
 0x24f   :  { %v674_v25 = vpop.f32.mrf.mxu1 }
 0x250   :  { %v739_v54 = vmax.f32 %v735_v49, %v674_v25  ;;  %v4048_v25 = vld [vmem:[%s4428_s28 + $0x30] sm:$0xff]  }
 0x251   :  { %v3340_v27 = vpop.f32.mrf.mxu1 }
 0x252   :  { %v744_v60 = vmax.f32 %v740_v55, %v3340_v27  ;;  %v4062_v27 = vld [vmem:[%s4428_s28 + $0x40] sm:$0xff]   ;;  %v1316_v55 = vsel %vm803_vm3, %v1244_v40, 0 }
 0x253   :  { %v687_v33 = vpop.f32.mrf.mxu1 }
 0x254   :  { %v742_v58 = vmax.f32 %v738_v53, %v687_v33  ;;  %v4099_v33 = vld [vmem:[%s4428_s28 + $0x68] sm:$0xff]  }
 0x255   :  { %v3341_v38 = vpop.f32.mrf.mxu1  ;;  %4429 = vst [vmem:[#allocation5_spill] sm:$0xff] %v4099_v33 }
 0x256   :  { %v745_v56 = vmax.f32 %v741_v51, %v3341_v38  ;;  %v3068_v38 = vld [vmem:[%s4394_s10 + $0x4] sm:$0xf] }
 0x257   :  { %v690_v43 = vpop.f32.mrf.mxu1  ;;  %3580 = vmatprep.subr.msk.bf16.mxu1 %vm803_vm3, %v3068_v38  ;;  %v1258_v39 = vsel %vm803_vm3, %v3068_v38, 0 }
 0x258   :  { %v743_v59 = vmax.f32 %v739_v54, %v690_v43 }
 0x259   :  { %v3344_v47 = vpop.f32.mrf.mxu1 }
 0x25a   :  { %v748_v1 = vmax.f32 %v744_v60, %v3344_v47 }
 0x25b   :  { %v703_v52 = vpop.f32.mrf.mxu1 }
 0x25c   :  { %v746_v63 = vmax.f32 %v742_v58, %v703_v52 }
 0x25d   :  { %v3345_v57 = vpop.f32.mrf.mxu1 }
 0x25e   :  { %v749_v61 = vmax.f32 %v745_v56, %v3345_v57  ;;  %v3073_v57 = vld [vmem:[%s4394_s10 + $0x8] sm:$0xf] }
 0x25f   :  { %v706_v62 = vpop.f32.mrf.mxu1 }
 0x260   :  { %v747_v0 = vmax.f32 %v743_v59, %v706_v62  ;;  %v788_v3 = vpack.c.bf16 %v749_v61, %v748_v1  ;;  %v3076_v1 = vld [vmem:[%s4394_s10 + $0xc] sm:$0xf] }
 0x262   :  { %v787_v2 = vpack.c.bf16 %v747_v0, %v746_v63  ;;  %v1378_v0 = vsel %vm803_vm3, %v3073_v57, 0 }
 0x264   :  { %3348 = vmatprep.mubr.msk.bf16.mxu0 %vm796_vm4, %v787_v2  ;;  %3354 = vmatprep.mubr.msk.bf16.mxu1 %vm796_vm4, %v787_v2 }
 0x265   :  { %3349 = vmatmul.mubr.msk.bf16.vlgmr.msra.gmra.mxu0 %vm796_vm4, %v788_v3  ;;  %3355 = vmatmul.mubr.msk.bf16.vlgmr.msra.gmra.mxu1 %vm796_vm4, %v788_v3 }
 0x266   :  { %3362 = vmatprep.mubr.msk.bf16.mxu0 %vm1012_vm5, %v4005_v4  ;;  %3399 = vmatpush3.bf16.msra.mxu1 %v1258_v39 }
 0x267   :  { %3581 = vmatprep.subr.msk.bf16.mxu1 %vm803_vm3, %v1244_v40 }
 0x325   :  { %v3356_v5 = vpop.f32.mrf.mxu1  ;;  %v4140_v41 = vpop.f32.mrf.mxu0 }
 0x326   :  { %v910_v8 = vadd.f32 %v3356_v5, %v3029_v6 }
 0x327   :  { %v901_v7 = vpop.f32.mrf.mxu1  ;;  %v4142_v32 = vpop.f32.mrf.mxu0 }
 0x328   :  { %v902_v10 = vadd.f32 %v3029_v6, %v901_v7  ;;  %v918_v13 = vmax.f32 %v910_v8, 0.0 }
 0x329   :  { %v3357_v9 = vpop.f32.mrf.mxu1  ;;  %v4144_v43 = vpop.f32.mrf.mxu0 }
 0x32a   :  { %v913_v11 = vadd.f32 %v3357_v9, %v3029_v6  ;;  %v916_v16 = vmax.f32 %v902_v10, 0.0  ;;  %v1444_v9 = vsel %vm803_vm3, %v3076_v1, 0  ;;  %v3079_v10 = vld [vmem:[%s4394_s10 + $0x10] sm:$0xf] }
 0x32b   :  { %v904_v12 = vpop.f32.mrf.mxu1  ;;  %v4146_v44 = vpop.f32.mrf.mxu0 }
 0x32c   :  { %v919_v14 = vmax.f32 %v913_v11, 0.0  ;;  %v905_v15 = vadd.f32 %v3029_v6, %v904_v12 }
 0x32e   :  { %v921_v17 = vpack.c.bf16 %v919_v14, %v918_v13  ;;  %v917_v18 = vmax.f32 %v905_v15, 0.0 }
 0x330   :  { %v920_v19 = vpack.c.bf16 %v917_v18, %v916_v16  ;;  %3358 = vmatprep.subr.bf16.mxu0 %v921_v17  ;;  %v3082_v18 = vld [vmem:[%s4394_s10 + $0x14] sm:$0xf] }
 0x331   :  { %3359 = vmatpush3.bf16.msra.mxu0 %v921_v17  ;;  %v1510_v17 = vsel %vm803_vm3, %v3079_v10, 0 }
 0x332   :  { %3360 = vmatprep.subr.bf16.mxu0 %v920_v19 }
 0x335   :  { %3361 = vmatpush3.bf16.msra.mxu0 %v920_v19 }
 0x338   :  { %3363 = vmatmul.mubr.msk.bf16.vlgmr.msra.gmra.mxu0 %vm1012_vm5, %v4015_v20 }
 0x339   :  { %3366 = vmatprep.mubr.msk.bf16.mxu0 %vm1012_vm5, %v4020_v21 }
 0x340   :  { %3367 = vmatmul.mubr.msk.bf16.gmra.mxu0 %vm1012_vm5, %v4029_v22 }
 0x341   :  { %3370 = vmatprep.mubr.msk.bf16.mxu0 %vm1012_vm5, %v4034_v23 }
 0x348   :  { %3371 = vmatmul.mubr.msk.bf16.gmra.mxu0 %vm1012_vm5, %v4043_v24 }
 0x349   :  { %3374 = vmatprep.mubr.msk.bf16.mxu0 %vm1012_vm5, %v4048_v25 }
 0x350   :  { %3375 = vmatmul.mubr.msk.bf16.gmra.mxu0 %vm1012_vm5, %v4057_v26 }
 0x351   :  { %3378 = vmatprep.mubr.msk.bf16.mxu0 %vm1012_vm5, %v4062_v27 }
 0x358   :  { %3379 = vmatmul.mubr.msk.bf16.gmra.mxu0 %vm1012_vm5, %v4071_v28 }
 0x359   :  { %3382 = vmatprep.mubr.msk.bf16.mxu0 %vm1012_vm5, %v4076_v29 }
 0x360   :  { %3383 = vmatmul.mubr.msk.bf16.gmra.mxu0 %vm1012_vm5, %v4085_v30 }
 0x361   :  { %3386 = vmatprep.mubr.msk.bf16.mxu0 %vm1012_vm5, %v4090_v31 }
 0x368   :  { %3387 = vmatmul.mubr.msk.bf16.gmra.mxu0 %vm1012_vm5, %v4099_v33 }
 0x369   :  { %3390 = vmatprep.mubr.msk.bf16.mxu0 %vm1012_vm5, %v4104_v34 }
 0x370   :  { %3391 = vmatmul.mubr.msk.bf16.gmra.mxu0 %vm1012_vm5, %v4113_v35 }
 0x371   :  { %3394 = vmatprep.mubr.msk.bf16.mxu0 %vm1012_vm5, %v4118_v36 }
 0x378   :  { %3395 = vmatmul.mubr.msk.bf16.gmra.mxu0 %vm1012_vm5, %v4127_v37 }
 0x3f8   :  { %v3364_v45 = vpop.f32.mrf.mxu0 }
 0x3fa   :  { %v1101_v42 = vpop.f32.mrf.mxu0 }
 0x3fc   :  { %v3365_v46 = vpop.f32.mrf.mxu0 }
 0x3fd   :  { %v1246_v62 = vpack.c.bf16 %v3365_v46, %v3364_v45  ;;  %v1576_v46 = vsel %vm803_vm3, %v3082_v18, 0 }
 0x3fe   :  { %v1104_v47 = vpop.f32.mrf.mxu0 }
 0x3ff   :  { %v1245_v56 = vpack.c.bf16 %v1104_v47, %v1101_v42  ;;  %v3085_v47 = vld [vmem:[%s4394_s10 + $0x18] sm:$0xf] }
 0x400   :  { %v3368_v48 = vpop.f32.mrf.mxu0 }
 0x402   :  { %v1117_v49 = vpop.f32.mrf.mxu0 }
 0x404   :  { %v3369_v50 = vpop.f32.mrf.mxu0 }
 0x405   :  { %v1250_v53 = vpack.c.bf16 %v3369_v50, %v3368_v48 }
 0x406   :  { %v1120_v51 = vpop.f32.mrf.mxu0 }
 0x407   :  { %v1249_v52 = vpack.c.bf16 %v1120_v51, %v1117_v49 }
 0x408   :  { %v3372_v54 = vpop.f32.mrf.mxu0 }
 0x409   :  { %3400 = vmatprep.mubr.msk.bf16.mxu1 %vm796_vm4, %v1249_v52 }
 0x40a   :  { %3401 = vmatmul.mubr.msk.bf16.vlgmr.msra.gmra.mxu1 %vm796_vm4, %v1250_v53  ;;  %v1133_v58 = vpop.f32.mrf.mxu0 }
 0x40b   :  { %3405 = vmatpush3.bf16.msra.mxu1 %v1316_v55  ;;  %3406 = vmatprep.mubr.msk.bf16.mxu1 %vm796_vm4, %v1245_v56  ;;  %v3088_v55 = vld [vmem:[%s4394_s10 + $0x1c] sm:$0xf] }
 0x40c   :  { %v3373_v59 = vpop.f32.mrf.mxu0  ;;  %3582 = vmatprep.subr.msk.bf16.mxu1 %vm803_vm3, %v3073_v57 }
 0x40d   :  { %v1370_v7 = vpack.c.bf16 %v3373_v59, %v3372_v54  ;;  %v1642_v54 = vsel %vm803_vm3, %v3085_v47, 0 }
 0x40e   :  { %v1136_v60 = vpop.f32.mrf.mxu0 }
 0x40f   :  { %v1369_v61 = vpack.c.bf16 %v1136_v60, %v1133_v58 }
 0x410   :  { %v3376_v63 = vpop.f32.mrf.mxu0 }
 0x412   :  { %3407 = vmatmul.mubr.msk.bf16.vlgmr.msra.gmra.mxu1 %vm796_vm4, %v1246_v62  ;;  %v1149_v2 = vpop.f32.mrf.mxu0  ;;  %v1708_v62 = vsel %vm803_vm3, %v3088_v55, 0 }
 0x413   :  { %3411 = vmatpush3.bf16.msra.mxu1 %v1378_v0  ;;  %3412 = vmatprep.mubr.msk.bf16.mxu1 %vm796_vm4, %v1369_v61 }
 0x414   :  { %v3377_v3 = vpop.f32.mrf.mxu0  ;;  %3583 = vmatprep.subr.msk.bf16.mxu1 %vm803_vm3, %v3076_v1 }
 0x415   :  { %v1436_v15 = vpack.c.bf16 %v3377_v3, %v3376_v63  ;;  %v3091_v63 = vld [vmem:[%s4394_s10 + $0x20] sm:$0xf] }
 0x416   :  { %v1152_v5 = vpop.f32.mrf.mxu0 }
 0x417   :  { %v1435_v6 = vpack.c.bf16 %v1152_v5, %v1149_v2 }
 0x418   :  { %v3380_v8 = vpop.f32.mrf.mxu0 }
 0x41a   :  { %3413 = vmatmul.mubr.msk.bf16.vlgmr.msra.gmra.mxu1 %vm796_vm4, %v1370_v7  ;;  %v1165_v11 = vpop.f32.mrf.mxu0 }
 0x41b   :  { %3417 = vmatpush3.bf16.msra.mxu1 %v1444_v9  ;;  %3418 = vmatprep.mubr.msk.bf16.mxu1 %vm796_vm4, %v1435_v6  ;;  %v1774_v6 = vsel %vm803_vm3, %v3091_v63, 0 }
 0x41c   :  { %v3381_v12 = vpop.f32.mrf.mxu0  ;;  %3584 = vmatprep.subr.msk.bf16.mxu1 %vm803_vm3, %v3079_v10 }
 0x41d   :  { %v1502_v45 = vpack.c.bf16 %v3381_v12, %v3380_v8  ;;  %v1844_v8 = vld [vmem:[%s4396_s12] sm:$0xf] }
 0x41e   :  { %v1168_v13 = vpop.f32.mrf.mxu0  ;;  %3589 = vmatprep.subr.msk.bf16.mxu0 %vm803_vm3, %v1844_v8  ;;  %v1861_v9 = vsel %vm803_vm3, %v1844_v8, 0 }
 0x41f   :  { %v1501_v14 = vpack.c.bf16 %v1168_v13, %v1165_v11  ;;  %3453 = vmatpush3.bf16.msra.mxu0 %v1861_v9 }
 0x420   :  { %v3384_v16 = vpop.f32.mrf.mxu0 }
 0x422   :  { %3419 = vmatmul.mubr.msk.bf16.vlgmr.msra.gmra.mxu1 %vm796_vm4, %v1436_v15  ;;  %v1181_v19 = vpop.f32.mrf.mxu0 }
 0x423   :  { %3423 = vmatpush3.bf16.msra.mxu1 %v1510_v17  ;;  %3424 = vmatprep.mubr.msk.bf16.mxu1 %vm796_vm4, %v1501_v14 }
 0x424   :  { %v3385_v38 = vpop.f32.mrf.mxu0  ;;  %3585 = vmatprep.subr.msk.bf16.mxu1 %vm803_vm3, %v3082_v18 }
 0x425   :  { %v1568_v52 = vpack.c.bf16 %v3385_v38, %v3384_v16 }
 0x426   :  { %v1184_v39 = vpop.f32.mrf.mxu0 }
 0x427   :  { %v1567_v40 = vpack.c.bf16 %v1184_v39, %v1181_v19 }
 0x428   :  { %v3388_v42 = vpop.f32.mrf.mxu0 }
 0x42a   :  { %3425 = vmatmul.mubr.msk.bf16.vlgmr.msra.gmra.mxu1 %vm796_vm4, %v1502_v45  ;;  %v1197_v48 = vpop.f32.mrf.mxu0 }
 0x42b   :  { %3429 = vmatpush3.bf16.msra.mxu1 %v1576_v46  ;;  %3430 = vmatprep.mubr.msk.bf16.mxu1 %vm796_vm4, %v1567_v40 }
 0x42c   :  { %v3389_v49 = vpop.f32.mrf.mxu0  ;;  %3586 = vmatprep.subr.msk.bf16.mxu1 %vm803_vm3, %v3085_v47 }
 0x42d   :  { %v1634_v60 = vpack.c.bf16 %v3389_v49, %v3388_v42 }
 0x42e   :  { %v1200_v50 = vpop.f32.mrf.mxu0 }
 0x42f   :  { %v1633_v51 = vpack.c.bf16 %v1200_v50, %v1197_v48 }
 0x430   :  { %v3392_v53 = vpop.f32.mrf.mxu0 }
 0x432   :  { %3431 = vmatmul.mubr.msk.bf16.vlgmr.msra.gmra.mxu1 %vm796_vm4, %v1568_v52  ;;  %v1213_v56 = vpop.f32.mrf.mxu0 }
 0x433   :  { %3435 = vmatpush3.bf16.msra.mxu1 %v1642_v54  ;;  %3436 = vmatprep.mubr.msk.bf16.mxu1 %vm796_vm4, %v1633_v51 }
 0x434   :  { %v3393_v57 = vpop.f32.mrf.mxu0  ;;  %3587 = vmatprep.subr.msk.bf16.mxu1 %vm803_vm3, %v3088_v55 }
 0x435   :  { %v1700_v5 = vpack.c.bf16 %v3393_v57, %v3392_v53 }
 0x436   :  { %v1216_v58 = vpop.f32.mrf.mxu0 }
 0x437   :  { %v1699_v59 = vpack.c.bf16 %v1216_v58, %v1213_v56 }
 0x438   :  { %v3396_v61 = vpop.f32.mrf.mxu0 }
 0x43a   :  { %3437 = vmatmul.mubr.msk.bf16.vlgmr.msra.gmra.mxu1 %vm796_vm4, %v1634_v60  ;;  %v1229_v0 = vpop.f32.mrf.mxu0 }
 0x43b   :  { %3441 = vmatpush3.bf16.msra.mxu1 %v1708_v62  ;;  %3442 = vmatprep.mubr.msk.bf16.mxu1 %vm796_vm4, %v1699_v59 }
 0x43c   :  { %v3397_v1 = vpop.f32.mrf.mxu0  ;;  %3588 = vmatprep.subr.msk.bf16.mxu1 %vm803_vm3, %v3091_v63 }
 0x43d   :  { %v1766_v7 = vpack.c.bf16 %v3397_v1, %v3396_v61 }
 0x43e   :  { %v1232_v2 = vpop.f32.mrf.mxu0 }
 0x43f   :  { %v1765_v3 = vpack.c.bf16 %v1232_v2, %v1229_v0 }
 0x442   :  { %3443 = vmatmul.mubr.msk.bf16.vlgmr.msra.gmra.mxu1 %vm796_vm4, %v1700_v5 }
 0x443   :  { %3447 = vmatpush3.bf16.msra.mxu1 %v1774_v6  ;;  %3448 = vmatprep.mubr.msk.bf16.mxu1 %vm796_vm4, %v1765_v3 }
 0x44a   :  { %3449 = vmatmul.mubr.msk.bf16.vlgmr.msra.gmra.mxu1 %vm796_vm4, %v1766_v7 }
 0x4ca   :  { %v3402_v10 = vpop.f32.mrf.mxu1 }
 0x4cc   :  { %v1294_v11 = vpop.f32.mrf.mxu1 }
 0x4ce   :  { %v3403_v12 = vpop.f32.mrf.mxu1 }
 0x4d0   :  { %v1297_v13 = vpop.f32.mrf.mxu1 }
 0x4d2   :  { %v3408_v14 = vpop.f32.mrf.mxu1 }
 0x4d3   :  { %v1361_v59 = vadd.f32 %v3408_v14, %v3402_v10 }
 0x4d4   :  { %v1352_v15 = vpop.f32.mrf.mxu1 }
 0x4d5   :  { %v1353_v58 = vadd.f32 %v1352_v15, %v1294_v11 }
 0x4d6   :  { %v3409_v16 = vpop.f32.mrf.mxu1 }
 0x4d7   :  { %v1364_v61 = vadd.f32 %v3409_v16, %v3403_v12 }
 0x4d8   :  { %v1355_v17 = vpop.f32.mrf.mxu1 }
 0x4d9   :  { %v1356_v1 = vadd.f32 %v1355_v17, %v1297_v13 }
 0x4da   :  { %v3414_v18 = vpop.f32.mrf.mxu1 }
 0x4db   :  { %v1431_v63 = vadd.f32 %v3414_v18, %v1361_v59 }
 0x4dc   :  { %v1414_v19 = vpop.f32.mrf.mxu1 }
 0x4dd   :  { %v1429_v62 = vadd.f32 %v1414_v19, %v1353_v58  ;;  %v3675_v58 = vld [vmem:[%s4398_s14] sm:$0xff]  }
 0x4de   :  { %v3415_v38 = vpop.f32.mrf.mxu1  ;;  %3458 = vmatprep.subr.bf16.mxu1 %v3675_v58 }
 0x4df   :  { %v1432_v2 = vadd.f32 %v3415_v38, %v1364_v61  ;;  %3459 = vmatpush3.bf16.msra.mxu1 %v3675_v58 }
 0x4e0   :  { %v1417_v39 = vpop.f32.mrf.mxu1 }
 0x4e1   :  { %v1430_v7 = vadd.f32 %v1417_v39, %v1356_v1 }
 0x4e2   :  { %v3420_v40 = vpop.f32.mrf.mxu1 }
 0x4e3   :  { %v1497_v5 = vadd.f32 %v3420_v40, %v1431_v63 }
 0x4e4   :  { %v1480_v45 = vpop.f32.mrf.mxu1 }
 0x4e5   :  { %v1495_v3 = vadd.f32 %v1480_v45, %v1429_v62  ;;  %v3026_v62 = vld [vmem:[%s4391_s7] ss:$0 sm:$0xff] }
 0x4e6   :  { %v3421_v42 = vpop.f32.mrf.mxu1 }
 0x4e7   :  { %v1498_v8 = vadd.f32 %v3421_v42, %v1432_v2  ;;  %v853_v2 = vadd.f32 %v4144_v43, %v3026_v62 }
 0x4e8   :  { %v1483_v46 = vpop.f32.mrf.mxu1 }
 0x4e9   :  { %v1496_v35 = vadd.f32 %v1483_v46, %v1430_v7  ;;  %v845_v7 = vadd.f32 %v3026_v62, %v4146_v44 }
 0x4ea   :  { %v3426_v47 = vpop.f32.mrf.mxu1 }
 0x4eb   :  { %v1563_v37 = vadd.f32 %v3426_v47, %v1497_v5  ;;  %v850_v5 = vadd.f32 %v4140_v41, %v3026_v62 }
 0x4ec   :  { %v1546_v48 = vpop.f32.mrf.mxu1 }
 0x4ed   :  { %v1561_v9 = vadd.f32 %v1546_v48, %v1495_v3 }
 0x4ee   :  { %v3427_v49 = vpop.f32.mrf.mxu1 }
 0x4ef   :  { %v1564_v34 = vadd.f32 %v3427_v49, %v1498_v8 }
 0x4f0   :  { %v1549_v50 = vpop.f32.mrf.mxu1 }
 0x4f1   :  { %v1562_v14 = vadd.f32 %v1549_v50, %v1496_v35 }
 0x4f2   :  { %v3432_v51 = vpop.f32.mrf.mxu1 }
 0x4f3   :  { %v1629_v11 = vadd.f32 %v3432_v51, %v1563_v37  ;;  %v3094_v37 = vld [vmem:[%s4395_s11] ss:$0 sm:$0xff] }
 0x4f4   :  { %v1612_v52 = vpop.f32.mrf.mxu1 }
 0x4f5   :  { %v1627_v33 = vadd.f32 %v1612_v52, %v1561_v9 }
 0x4f6   :  { %v3433_v53 = vpop.f32.mrf.mxu1 }
 0x4f7   :  { %v1630_v12 = vadd.f32 %v3433_v53, %v1564_v34 }
 0x4f8   :  { %v1615_v54 = vpop.f32.mrf.mxu1 }
 0x4f9   :  { %v1628_v13 = vadd.f32 %v1615_v54, %v1562_v14 }
 0x4fa   :  { %v3438_v55 = vpop.f32.mrf.mxu1 }
 0x4fb   :  { %v1695_v16 = vadd.f32 %v3438_v55, %v1629_v11 }
 0x4fc   :  { %v1678_v56 = vpop.f32.mrf.mxu1 }
 0x4fd   :  { %v1693_v15 = vadd.f32 %v1678_v56, %v1627_v33 }
 0x4fe   :  { %v3439_v57 = vpop.f32.mrf.mxu1 }
 0x4ff   :  { %v1696_v17 = vadd.f32 %v3439_v57, %v1630_v12 }
 0x500   :  { %v1681_v60 = vpop.f32.mrf.mxu1 }
 0x501   :  { %v1694_v39 = vadd.f32 %v1681_v60, %v1628_v13  ;;  %v3095_v60 = vld [vmem:[%s4397_s13] ss:$0 sm:$0xff]  ;;  %s4439_s13 = sld [smem:[#allocation15_spill]] }
 0x502   :  { %v3444_v0 = vpop.f32.mrf.mxu1 }
 0x503   :  { %v1761_v38 = vadd.f32 %v3444_v0, %v1695_v16 }
 0x504   :  { %v1744_v6 = vpop.f32.mrf.mxu1 }
 0x505   :  { %v1759_v19 = vadd.f32 %v1744_v6, %v1693_v15 }
 0x506   :  { %v3445_v36 = vpop.f32.mrf.mxu1 }
 0x507   :  { %v1762_v45 = vadd.f32 %v3445_v36, %v1696_v17 }
 0x508   :  { %v1747_v10 = vpop.f32.mrf.mxu1 }
 0x509   :  { %v1760_v46 = vadd.f32 %v1747_v10, %v1694_v39 }
 0x50a   :  { %v3450_v18 = vpop.f32.mrf.mxu1 }
 0x50b   :  { %v1827_v47 = vadd.f32 %v3450_v18, %v1761_v38  ;;  %v3098_v18 = vld [vmem:[%s4399_s15] ss:$0 sm:$0xff] }
 0x50c   :  { %v1810_v40 = vpop.f32.mrf.mxu1 }
 0x50d   :  { %v1825_v42 = vadd.f32 %v1810_v40, %v1759_v19  ;;  %v1838_v51 = vadd.f32 %v3094_v37, %v1827_v47 }
 0x50e   :  { %v3451_v48 = vpop.f32.mrf.mxu1 }
 0x50f   :  { %v1828_v35 = vadd.f32 %v3451_v48, %v1762_v45  ;;  %v1836_v33 = vadd.f32 %v3094_v37, %v1825_v42  ;;  %v1842_v56 = vmax.f32 %v1838_v51, 0.0 }
 0x510   :  { %v1813_v34 = vpop.f32.mrf.mxu1 }
 0x511   :  { %v1839_v49 = vadd.f32 %v3094_v37, %v1828_v35  ;;  %v1826_v50 = vadd.f32 %v1813_v34, %v1760_v46  ;;  %v1840_v54 = vmax.f32 %v1836_v33, 0.0 }
 0x513   :  { %v1837_v52 = vadd.f32 %v3094_v37, %v1826_v50  ;;  %v1843_v53 = vmax.f32 %v1839_v49, 0.0 }
 0x515   :  { %v1841_v55 = vmax.f32 %v1837_v52, 0.0  ;;  %v1846_v57 = vpack.c.bf16 %v1843_v53, %v1842_v56  ;;  %v3125_v56 = vld [vmem:[%s4400_s16 + $0x8] sm:$0xf] }
 0x517   :  { %v1845_v36 = vpack.c.bf16 %v1841_v55, %v1840_v54 }
 0x519   :  { %3454 = vmatprep.mubr.msk.bf16.mxu0 %vm796_vm4, %v1845_v36 }
 0x51a   :  { %3455 = vmatmul.mubr.msk.bf16.vlgmr.msra.gmra.mxu0 %vm796_vm4, %v1846_v57 }
 0x51b   :  { %3468 = vmatprep.mubr.msk.bf16.mxu0 %vm1012_vm5, %v4005_v4  ;;  %v842_v4 = vadd.f32 %v3026_v62, %v4142_v32  ;;  %v2310_v62 = vsel %vm803_vm3, %v3125_v56, 0 }
 0x5da   :  { %v3456_v59 = vpop.f32.mrf.mxu0 }
 0x5db   :  { %v1906_v0 = vadd.f32 %v3456_v59, %v3095_v60 }
 0x5dc   :  { %v1897_v61 = vpop.f32.mrf.mxu0 }
 0x5dd   :  { %v1898_v63 = vadd.f32 %v3095_v60, %v1897_v61  ;;  %v4231_v10 = vadd.f32 %v1906_v0, %v850_v5 }
 0x5de   :  { %v3457_v1 = vpop.f32.mrf.mxu0 }
 0x5df   :  { %v1909_v3 = vadd.f32 %v3457_v1, %v3095_v60  ;;  %v4227_v8 = vadd.f32 %v1898_v63, %v842_v4  ;;  %v1918_v41 = vmax.f32 %v4231_v10, 0.0  ;;  %v3128_v63 = vld [vmem:[%s4400_s16 + $0xc] sm:$0xf] }
 0x5e0   :  { %v1900_v6 = vpop.f32.mrf.mxu0 }
 0x5e1   :  { %v4229_v9 = vadd.f32 %v1909_v3, %v853_v2  ;;  %v1901_v11 = vadd.f32 %v3095_v60, %v1900_v6  ;;  %v1916_v32 = vmax.f32 %v4227_v8, 0.0  ;;  %v2376_v6 = vsel %vm803_vm3, %v3128_v63, 0 }
 0x5e3   :  { %v4233_v14 = vadd.f32 %v1901_v11, %v845_v7  ;;  %v1919_v12 = vmax.f32 %v4229_v9, 0.0  ;;  %v3131_v7 = vld [vmem:[%s4400_s16 + $0x10] sm:$0xf]  ;;  %v2852_v9 = vld [vmem:[%s4439_s13] sm:$0x1] }
 0x5e5   :  { %v1917_v43 = vmax.f32 %v4233_v14, 0.0  ;;  %v1923_v15 = vpack.c.bf16 %v1919_v12, %v1918_v41 }
 0x5e7   :  { %v1922_v44 = vpack.c.bf16 %v1917_v43, %v1916_v32 }
 0x5e9   :  { %3460 = vmatprep.mubr.msk.bf16.mxu1 %vm1937_vm6, %v1922_v44 }
 0x5ea   :  { %3461 = vmatmul.mubr.msk.bf16.vlgmr.msra.gmra.mxu1 %vm1937_vm6, %v1923_v15 }
 0x6aa   :  { %v3462_v16 = vpop.f32.mrf.mxu1 }
 0x6ab   :  { %v1987_v17 = vadd.f32 %v3462_v16, %v3098_v18 }
 0x6ac   :  { %v1978_v13 = vpop.f32.mrf.mxu1 }
 0x6ad   :  { %v1979_v38 = vadd.f32 %v3098_v18, %v1978_v13  ;;  %v1995_v45 = vmax.f32 %v1987_v17, 0.0  ;;  %v2442_v17 = vsel %vm803_vm3, %v3131_v7, 0 }
 0x6ae   :  { %v3463_v19 = vpop.f32.mrf.mxu1 }
 0x6af   :  { %v1990_v40 = vadd.f32 %v3463_v19, %v3098_v18  ;;  %v1993_v48 = vmax.f32 %v1979_v38, 0.0  ;;  %v3134_v19 = vld [vmem:[%s4400_s16 + $0x14] sm:$0xf] }
 0x6b0   :  { %v1981_v39 = vpop.f32.mrf.mxu1 }
 0x6b1   :  { %v1996_v42 = vmax.f32 %v1990_v40, 0.0  ;;  %v1982_v47 = vadd.f32 %v3098_v18, %v1981_v39 }
 0x6b3   :  { %v1998_v46 = vpack.c.bf16 %v1996_v42, %v1995_v45  ;;  %v1994_v37 = vmax.f32 %v1982_v47, 0.0 }
 0x6b5   :  { %v1997_v35 = vpack.c.bf16 %v1994_v37, %v1993_v48  ;;  %3464 = vmatprep.subr.bf16.mxu0 %v1998_v46  ;;  %v2508_v48 = vsel %vm803_vm3, %v3134_v19, 0 }
 0x6b6   :  { %3465 = vmatpush3.bf16.msra.mxu0 %v1998_v46  ;;  %v3137_v46 = vld [vmem:[%s4400_s16 + $0x18] sm:$0xf] }
 0x6b7   :  { %3466 = vmatprep.subr.bf16.mxu0 %v1997_v35 }
 0x6ba   :  { %3467 = vmatpush3.bf16.msra.mxu0 %v1997_v35 }
 0x6bd   :  { %3469 = vmatmul.mubr.msk.bf16.vlgmr.msra.gmra.mxu0 %vm1012_vm5, %v4015_v20  ;;  %v4434_v20 = vld [vmem:[#allocation5_spill] sm:$0xff] }
 0x6be   :  { %3472 = vmatprep.mubr.msk.bf16.mxu0 %vm1012_vm5, %v4020_v21  ;;  %v4435_v21 = vld [vmem:[#allocation6_spill] sm:$0xff] }
 0x6c5   :  { %3473 = vmatmul.mubr.msk.bf16.gmra.mxu0 %vm1012_vm5, %v4029_v22  ;;  %v4436_v22 = vld [vmem:[#allocation7_spill] sm:$0xff] }
 0x6c6   :  { %3476 = vmatprep.mubr.msk.bf16.mxu0 %vm1012_vm5, %v4034_v23  ;;  %v4437_v23 = vld [vmem:[#allocation8_spill] sm:$0xff] }
 0x6cd   :  { %3477 = vmatmul.mubr.msk.bf16.gmra.mxu0 %vm1012_vm5, %v4043_v24  ;;  %v4438_v24 = vld [vmem:[#allocation9_spill] sm:$0xff] }
 0x6ce   :  { %3480 = vmatprep.mubr.msk.bf16.mxu0 %vm1012_vm5, %v4048_v25  ;;  %v3120_v25 = vld [vmem:[%s4400_s16 + $0x4] sm:$0xf] }
 0x6cf   :  { %3590 = vmatprep.subr.msk.bf16.mxu1 %vm803_vm3, %v3120_v25 }
 0x6d5   :  { %3481 = vmatmul.mubr.msk.bf16.gmra.mxu0 %vm1012_vm5, %v4057_v26  ;;  %v2190_v26 = vsel %vm803_vm3, %v3120_v25, 0  ;;  %v3140_v25 = vld [vmem:[%s4400_s16 + $0x1c] sm:$0xf] }
 0x6d6   :  { %3484 = vmatprep.mubr.msk.bf16.mxu0 %vm1012_vm5, %v4062_v27  ;;  %3505 = vmatpush3.bf16.msra.mxu1 %v2190_v26  ;;  %v2176_v27 = vld [vmem:[%s4400_s16] sm:$0xf] }
 0x6d7   :  { %3591 = vmatprep.subr.msk.bf16.mxu1 %vm803_vm3, %v2176_v27  ;;  %v2248_v54 = vsel %vm803_vm3, %v2176_v27, 0 }
 0x6dd   :  { %3485 = vmatmul.mubr.msk.bf16.gmra.mxu0 %vm1012_vm5, %v4071_v28 }
 0x6de   :  { %3488 = vmatprep.mubr.msk.bf16.mxu0 %vm1012_vm5, %v4076_v29 }
 0x6e5   :  { %3489 = vmatmul.mubr.msk.bf16.gmra.mxu0 %vm1012_vm5, %v4085_v30 }
 0x6e6   :  { %3492 = vmatprep.mubr.msk.bf16.mxu0 %vm1012_vm5, %v4090_v31 }
 0x6ed   :  { %3493 = vmatmul.mubr.msk.bf16.gmra.mxu0 %vm1012_vm5, %v4434_v20 }
 0x6ee   :  { %3496 = vmatprep.mubr.msk.bf16.mxu0 %vm1012_vm5, %v4435_v21 }
 0x6f5   :  { %3497 = vmatmul.mubr.msk.bf16.gmra.mxu0 %vm1012_vm5, %v4436_v22 }
 0x6f6   :  { %3500 = vmatprep.mubr.msk.bf16.mxu0 %vm1012_vm5, %v4437_v23 }
 0x6fd   :  { %3501 = vmatmul.mubr.msk.bf16.gmra.mxu0 %vm1012_vm5, %v4438_v24  ;;  %v2574_v24 = vsel %vm803_vm3, %v3137_v46, 0 }
 0x77d   :  { %v3470_v28 = vpop.f32.mrf.mxu0 }
 0x77f   :  { %v2033_v29 = vpop.f32.mrf.mxu0 }
 0x781   :  { %v3471_v30 = vpop.f32.mrf.mxu0 }
 0x782   :  { %v2178_v60 = vpack.c.bf16 %v3471_v30, %v3470_v28 }
 0x783   :  { %v2036_v31 = vpop.f32.mrf.mxu0 }
 0x784   :  { %v2177_v55 = vpack.c.bf16 %v2036_v31, %v2033_v29 }
 0x785   :  { %v3474_v34 = vpop.f32.mrf.mxu0 }
 0x787   :  { %v2049_v33 = vpop.f32.mrf.mxu0 }
 0x789   :  { %v3475_v49 = vpop.f32.mrf.mxu0 }
 0x78a   :  { %v2182_v52 = vpack.c.bf16 %v3475_v49, %v3474_v34  ;;  %v2640_v34 = vsel %vm803_vm3, %v3140_v25, 0 }
 0x78b   :  { %v2052_v50 = vpop.f32.mrf.mxu0 }
 0x78c   :  { %v2181_v51 = vpack.c.bf16 %v2052_v50, %v2049_v33  ;;  %v3143_v33 = vld [vmem:[%s4400_s16 + $0x20] sm:$0xf] }
 0x78d   :  { %v3478_v53 = vpop.f32.mrf.mxu0 }
 0x78e   :  { %3506 = vmatprep.mubr.msk.bf16.mxu1 %vm796_vm4, %v2181_v51 }
 0x78f   :  { %3507 = vmatmul.mubr.msk.bf16.vlgmr.msra.gmra.mxu1 %vm796_vm4, %v2182_v52  ;;  %v2065_v36 = vpop.f32.mrf.mxu0 }
 0x790   :  { %3511 = vmatpush3.bf16.msra.mxu1 %v2248_v54  ;;  %3512 = vmatprep.mubr.msk.bf16.mxu1 %vm796_vm4, %v2177_v55  ;;  %v2706_v54 = vsel %vm803_vm3, %v3143_v33, 0 }
 0x791   :  { %v3479_v57 = vpop.f32.mrf.mxu0  ;;  %3592 = vmatprep.subr.msk.bf16.mxu1 %vm803_vm3, %v3125_v56  ;;  %v2776_v56 = vld [vmem:[%s4402_s18] sm:$0xf] }
 0x792   :  { %v2302_v3 = vpack.c.bf16 %v3479_v57, %v3478_v53  ;;  %3599 = vmatprep.subr.msk.bf16.mxu0 %vm803_vm3, %v2776_v56 }
 0x793   :  { %v2068_v58 = vpop.f32.mrf.mxu0 }
 0x794   :  { %v2301_v59 = vpack.c.bf16 %v2068_v58, %v2065_v36  ;;  %v2793_v36 = vsel %vm803_vm3, %v2776_v56, 0 }
 0x795   :  { %v3482_v61 = vpop.f32.mrf.mxu0  ;;  %3559 = vmatpush3.bf16.msra.mxu0 %v2793_v36 }
 0x797   :  { %3513 = vmatmul.mubr.msk.bf16.vlgmr.msra.gmra.mxu1 %vm796_vm4, %v2178_v60  ;;  %v2081_v0 = vpop.f32.mrf.mxu0 }
 0x798   :  { %3517 = vmatpush3.bf16.msra.mxu1 %v2310_v62  ;;  %3518 = vmatprep.mubr.msk.bf16.mxu1 %vm796_vm4, %v2301_v59 }
 0x799   :  { %v3483_v1 = vpop.f32.mrf.mxu0  ;;  %3593 = vmatprep.subr.msk.bf16.mxu1 %vm803_vm3, %v3128_v63 }
 0x79a   :  { %v2368_v18 = vpack.c.bf16 %v3483_v1, %v3482_v61 }
 0x79b   :  { %v2084_v4 = vpop.f32.mrf.mxu0 }
 0x79c   :  { %v2367_v2 = vpack.c.bf16 %v2084_v4, %v2081_v0 }
 0x79d   :  { %v3486_v5 = vpop.f32.mrf.mxu0 }
 0x79f   :  { %3519 = vmatmul.mubr.msk.bf16.vlgmr.msra.gmra.mxu1 %vm796_vm4, %v2302_v3  ;;  %v2097_v11 = vpop.f32.mrf.mxu0 }
 0x7a0   :  { %3523 = vmatpush3.bf16.msra.mxu1 %v2376_v6  ;;  %3524 = vmatprep.mubr.msk.bf16.mxu1 %vm796_vm4, %v2367_v2 }
 0x7a1   :  { %v3487_v44 = vpop.f32.mrf.mxu0  ;;  %3594 = vmatprep.subr.msk.bf16.mxu1 %vm803_vm3, %v3131_v7 }
 0x7a2   :  { %v2434_v42 = vpack.c.bf16 %v3487_v44, %v3486_v5 }
 0x7a3   :  { %v2100_v15 = vpop.f32.mrf.mxu0 }
 0x7a4   :  { %v2433_v16 = vpack.c.bf16 %v2100_v15, %v2097_v11 }
 0x7a5   :  { %v3490_v13 = vpop.f32.mrf.mxu0 }
 0x7a7   :  { %3525 = vmatmul.mubr.msk.bf16.vlgmr.msra.gmra.mxu1 %vm796_vm4, %v2368_v18  ;;  %v2113_v38 = vpop.f32.mrf.mxu0 }
 0x7a8   :  { %3529 = vmatpush3.bf16.msra.mxu1 %v2442_v17  ;;  %3530 = vmatprep.mubr.msk.bf16.mxu1 %vm796_vm4, %v2433_v16 }
 0x7a9   :  { %v3491_v40 = vpop.f32.mrf.mxu0  ;;  %3595 = vmatprep.subr.msk.bf16.mxu1 %vm803_vm3, %v3134_v19 }
 0x7aa   :  { %v2500_v22 = vpack.c.bf16 %v3491_v40, %v3490_v13 }
 0x7ab   :  { %v2116_v39 = vpop.f32.mrf.mxu0 }
 0x7ac   :  { %v2499_v45 = vpack.c.bf16 %v2116_v39, %v2113_v38 }
 0x7ad   :  { %v3494_v47 = vpop.f32.mrf.mxu0 }
 0x7af   :  { %3531 = vmatmul.mubr.msk.bf16.vlgmr.msra.gmra.mxu1 %vm796_vm4, %v2434_v42  ;;  %v2129_v37 = vpop.f32.mrf.mxu0 }
 0x7b0   :  { %3535 = vmatpush3.bf16.msra.mxu1 %v2508_v48  ;;  %3536 = vmatprep.mubr.msk.bf16.mxu1 %vm796_vm4, %v2499_v45 }
 0x7b1   :  { %v3495_v35 = vpop.f32.mrf.mxu0  ;;  %3596 = vmatprep.subr.msk.bf16.mxu1 %vm803_vm3, %v3137_v46 }
 0x7b2   :  { %v2566_v30 = vpack.c.bf16 %v3495_v35, %v3494_v47 }
 0x7b3   :  { %v2132_v20 = vpop.f32.mrf.mxu0 }
 0x7b4   :  { %v2565_v21 = vpack.c.bf16 %v2132_v20, %v2129_v37 }
 0x7b5   :  { %v3498_v23 = vpop.f32.mrf.mxu0 }
 0x7b7   :  { %3537 = vmatmul.mubr.msk.bf16.vlgmr.msra.gmra.mxu1 %vm796_vm4, %v2500_v22  ;;  %v2145_v26 = vpop.f32.mrf.mxu0 }
 0x7b8   :  { %3541 = vmatpush3.bf16.msra.mxu1 %v2574_v24  ;;  %3542 = vmatprep.mubr.msk.bf16.mxu1 %vm796_vm4, %v2565_v21 }
 0x7b9   :  { %v3499_v27 = vpop.f32.mrf.mxu0  ;;  %3597 = vmatprep.subr.msk.bf16.mxu1 %vm803_vm3, %v3140_v25 }
 0x7ba   :  { %v2632_v53 = vpack.c.bf16 %v3499_v27, %v3498_v23 }
 0x7bb   :  { %v2148_v28 = vpop.f32.mrf.mxu0 }
 0x7bc   :  { %v2631_v29 = vpack.c.bf16 %v2148_v28, %v2145_v26 }
 0x7bd   :  { %v3502_v31 = vpop.f32.mrf.mxu0 }
 0x7bf   :  { %3543 = vmatmul.mubr.msk.bf16.vlgmr.msra.gmra.mxu1 %vm796_vm4, %v2566_v30  ;;  %v2161_v49 = vpop.f32.mrf.mxu0 }
 0x7c0   :  { %3547 = vmatpush3.bf16.msra.mxu1 %v2640_v34  ;;  %3548 = vmatprep.mubr.msk.bf16.mxu1 %vm796_vm4, %v2631_v29 }
 0x7c1   :  { %v3503_v50 = vpop.f32.mrf.mxu0  ;;  %3598 = vmatprep.subr.msk.bf16.mxu1 %vm803_vm3, %v3143_v33 }
 0x7c2   :  { %v2698_v55 = vpack.c.bf16 %v3503_v50, %v3502_v31 }
 0x7c3   :  { %v2164_v51 = vpop.f32.mrf.mxu0 }
 0x7c4   :  { %v2697_v52 = vpack.c.bf16 %v2164_v51, %v2161_v49 }
 0x7c7   :  { %3549 = vmatmul.mubr.msk.bf16.vlgmr.msra.gmra.mxu1 %vm796_vm4, %v2632_v53 }
 0x7c8   :  { %3553 = vmatpush3.bf16.msra.mxu1 %v2706_v54  ;;  %3554 = vmatprep.mubr.msk.bf16.mxu1 %vm796_vm4, %v2697_v52 }
 0x7cf   :  { %3555 = vmatmul.mubr.msk.bf16.vlgmr.msra.gmra.mxu1 %vm796_vm4, %v2698_v55 }
 0x84f   :  { %v3508_v57 = vpop.f32.mrf.mxu1 }
 0x851   :  { %v2226_v58 = vpop.f32.mrf.mxu1 }
 0x853   :  { %v3509_v59 = vpop.f32.mrf.mxu1 }
 0x855   :  { %v2229_v60 = vpop.f32.mrf.mxu1 }
 0x857   :  { %v3514_v61 = vpop.f32.mrf.mxu1 }
 0x858   :  { %v2293_v47 = vadd.f32 %v3514_v61, %v3508_v57 }
 0x859   :  { %v2284_v62 = vpop.f32.mrf.mxu1 }
 0x85a   :  { %v2285_v42 = vadd.f32 %v2284_v62, %v2226_v58 }
 0x85b   :  { %v3515_v63 = vpop.f32.mrf.mxu1 }
 0x85c   :  { %v2296_v46 = vadd.f32 %v3515_v63, %v3509_v59 }
 0x85d   :  { %v2287_v0 = vpop.f32.mrf.mxu1 }
 0x85e   :  { %v2288_v21 = vadd.f32 %v2287_v0, %v2229_v60 }
 0x85f   :  { %v3520_v1 = vpop.f32.mrf.mxu1 }
 0x860   :  { %v2363_v35 = vadd.f32 %v3520_v1, %v2293_v47 }
 0x861   :  { %v2346_v4 = vpop.f32.mrf.mxu1 }
 0x862   :  { %v2361_v37 = vadd.f32 %v2346_v4, %v2285_v42  ;;  %v3146_v4 = vld [vmem:[%s4401_s17] ss:$0 sm:$0xff] }
 0x863   :  { %v3521_v2 = vpop.f32.mrf.mxu1 }
 0x864   :  { %v2364_v22 = vadd.f32 %v3521_v2, %v2296_v46 }
 0x865   :  { %v2349_v3 = vpop.f32.mrf.mxu1 }
 0x866   :  { %v2362_v26 = vadd.f32 %v2349_v3, %v2288_v21 }
 0x867   :  { %v3526_v5 = vpop.f32.mrf.mxu1 }
 0x868   :  { %v2429_v24 = vadd.f32 %v3526_v5, %v2363_v35 }
 0x869   :  { %v2412_v6 = vpop.f32.mrf.mxu1 }
 0x86a   :  { %v2427_v23 = vadd.f32 %v2412_v6, %v2361_v37 }
 0x86b   :  { %v3527_v7 = vpop.f32.mrf.mxu1 }
 0x86c   :  { %v2430_v27 = vadd.f32 %v3527_v7, %v2364_v22 }
 0x86d   :  { %v2415_v11 = vpop.f32.mrf.mxu1 }
 0x86e   :  { %v2428_v31 = vadd.f32 %v2415_v11, %v2362_v26 }
 0x86f   :  { %v3532_v44 = vpop.f32.mrf.mxu1 }
 0x870   :  { %v2495_v29 = vadd.f32 %v3532_v44, %v2429_v24 }
 0x871   :  { %v2478_v15 = vpop.f32.mrf.mxu1 }
 0x872   :  { %v2493_v28 = vadd.f32 %v2478_v15, %v2427_v23 }
 0x873   :  { %v3533_v16 = vpop.f32.mrf.mxu1 }
 0x874   :  { %v2496_v34 = vadd.f32 %v3533_v16, %v2430_v27 }
 0x875   :  { %v2481_v18 = vpop.f32.mrf.mxu1 }
 0x876   :  { %v2494_v51 = vadd.f32 %v2481_v18, %v2428_v31 }
 0x877   :  { %v3538_v13 = vpop.f32.mrf.mxu1 }
 0x878   :  { %v2561_v49 = vadd.f32 %v3538_v13, %v2495_v29 }
 0x879   :  { %v2544_v17 = vpop.f32.mrf.mxu1 }
 0x87a   :  { %v2559_v33 = vadd.f32 %v2544_v17, %v2493_v28 }
 0x87b   :  { %v3539_v19 = vpop.f32.mrf.mxu1 }
 0x87c   :  { %v2562_v52 = vadd.f32 %v3539_v19, %v2496_v34 }
 0x87d   :  { %v2547_v38 = vpop.f32.mrf.mxu1 }
 0x87e   :  { %v2560_v56 = vadd.f32 %v2547_v38, %v2494_v51  ;;  %v3701_v38 = vmov 0.0  }
 0x87f   :  { %v3544_v40 = vpop.f32.mrf.mxu1  ;;  %3564 = vmatprep.subr.bf16.mxu1 %v3701_v38  ;;  %3572 = vmatprep.subr.bf16.mxu0 %v3701_v38 }
 0x880   :  { %v2627_v54 = vadd.f32 %v3544_v40, %v2561_v49  ;;  %3568 = vmatprep.mubr.msk.bf16.mxu1 %vm3702_vm7, %v3701_v38  ;;  %v3676_v40 = vld [vmem:[%s4404_s20] sm:$0xff]  }
 0x881   :  { %v2610_v39 = vpop.f32.mrf.mxu1 }
 0x882   :  { %v2625_v53 = vadd.f32 %v2610_v39, %v2559_v33  ;;  %v3147_v39 = vld [vmem:[%s4403_s19] ss:$0 sm:$0xff] }
 0x883   :  { %v3545_v45 = vpop.f32.mrf.mxu1 }
 0x884   :  { %v2628_v36 = vadd.f32 %v3545_v45, %v2562_v52 }
 0x885   :  { %v2613_v48 = vpop.f32.mrf.mxu1 }
 0x886   :  { %v2626_v60 = vadd.f32 %v2613_v48, %v2560_v56 }
 0x887   :  { %v3550_v20 = vpop.f32.mrf.mxu1 }
 0x888   :  { %v2693_v58 = vadd.f32 %v3550_v20, %v2627_v54 }
 0x889   :  { %v2676_v25 = vpop.f32.mrf.mxu1 }
 0x88a   :  { %v2691_v57 = vadd.f32 %v2676_v25, %v2625_v53 }
 0x88b   :  { %v3551_v30 = vpop.f32.mrf.mxu1 }
 0x88c   :  { %v2694_v61 = vadd.f32 %v3551_v30, %v2628_v36 }
 0x88d   :  { %v2679_v50 = vpop.f32.mrf.mxu1 }
 0x88e   :  { %v2692_v1 = vadd.f32 %v2679_v50, %v2626_v60 }
 0x88f   :  { %v3556_v55 = vpop.f32.mrf.mxu1 }
 0x890   :  { %v2759_v63 = vadd.f32 %v3556_v55, %v2693_v58 }
 0x891   :  { %v2742_v59 = vpop.f32.mrf.mxu1 }
 0x892   :  { %v2757_v62 = vadd.f32 %v2742_v59, %v2691_v57  ;;  %v2770_v11 = vadd.f32 %v3146_v4, %v2759_v63 }
 0x893   :  { %v3557_v0 = vpop.f32.mrf.mxu1 }
 0x894   :  { %v2760_v2 = vadd.f32 %v3557_v0, %v2694_v61  ;;  %v2768_v5 = vadd.f32 %v3146_v4, %v2757_v62  ;;  %v2774_v13 = vmax.f32 %v2770_v11, 0.0 }
 0x895   :  { %v2745_v3 = vpop.f32.mrf.mxu1 }
 0x896   :  { %v2771_v6 = vadd.f32 %v3146_v4, %v2760_v2  ;;  %v2758_v7 = vadd.f32 %v2745_v3, %v2692_v1  ;;  %v2772_v16 = vmax.f32 %v2768_v5, 0.0 }
 0x898   :  { %v2769_v44 = vadd.f32 %v3146_v4, %v2758_v7  ;;  %v2775_v15 = vmax.f32 %v2771_v6, 0.0 }
 0x89a   :  { %v2773_v18 = vmax.f32 %v2769_v44, 0.0  ;;  %v2778_v19 = vpack.c.bf16 %v2775_v15, %v2774_v13 }
 0x89c   :  { %v2777_v17 = vpack.c.bf16 %v2773_v18, %v2772_v16 }
 0x89e   :  { %3560 = vmatprep.mubr.msk.bf16.mxu0 %vm796_vm4, %v2777_v17 }
 0x89f   :  { %3561 = vmatmul.mubr.msk.bf16.vlgmr.msra.gmra.mxu0 %vm796_vm4, %v2778_v19 }
 0x8a0   :  { %3574 = vmatprep.mubr.msk.bf16.mxu0 %vm3702_vm7, %v3701_v38  ;;  %3573 = vmatpush3.bf16.msra.mxu0 %v3676_v40 }
 0x95f   :  { %v3562_v45 = vpop.f32.mrf.mxu0 }
 0x960   :  { %v2838_v42 = vadd.f32 %v3562_v45, %v3147_v39 }
 0x961   :  { %v2829_v47 = vpop.f32.mrf.mxu0 }
 0x962   :  { %v2846_v46 = vadd.f32 %v2838_v42, %v1918_v41  ;;  %v2830_v37 = vadd.f32 %v3147_v39, %v2829_v47  ;;  %v3151_v41 = vld [vmem:[%s4405_s21] ss:$0 sm:$0xff] }
 0x963   :  { %v3563_v48 = vpop.f32.mrf.mxu0 }
 0x964   :  { %v2841_v35 = vadd.f32 %v3563_v48, %v3147_v39  ;;  %v2850_v23 = vmax.f32 %v2846_v46, 0.0  ;;  %v2844_v24 = vadd.f32 %v2830_v37, %v1916_v32 }
 0x965   :  { %v2832_v20 = vpop.f32.mrf.mxu0 }
 0x966   :  { %v2847_v21 = vadd.f32 %v2841_v35, %v1919_v12  ;;  %v2833_v22 = vadd.f32 %v3147_v39, %v2832_v20  ;;  %v2848_v29 = vmax.f32 %v2844_v24, 0.0 }
 0x968   :  { %v2851_v25 = vmax.f32 %v2847_v21, 0.0  ;;  %v2845_v26 = vadd.f32 %v2833_v22, %v1917_v43 }
 0x96a   :  { %v2854_v27 = vpack.c.bf16 %v2851_v25, %v2850_v23  ;;  %v2849_v28 = vmax.f32 %v2845_v26, 0.0 }
 0x96c   :  { %3565 = vmatpush3.bf16.msra.mxu1 %v2854_v27  ;;  %v2853_v10 = vpack.c.bf16 %v2849_v28, %v2848_v29 }
 0x96d   :  { %3566 = vmatprep.subr.bf16.mxu1 %v3701_v38 }
 0x970   :  { %3567 = vmatpush3.bf16.msra.mxu1 %v2853_v10 }
 0x973   :  { %3569 = vmatmul.mubr.msk.bf16.vlgmr.msra.gmra.mxu1 %vm1012_vm5, %v2852_v9 }
 0xa33   :  { %v2892_v12 = vpop.f32.mrf.mxu1 }
 0xa34   :  { %v2900_v8 = vpack.c.bf16 %v2892_v12, %v2892_v12 }
 0xa35   :  { %v3570_v32 = vpop.f32.mrf.mxu1 }
 0xa36   :  { %3575 = vmatmul.mubr.msk.bf16.vlgmr.msra.gmra.mxu0 %vm1937_vm6, %v2900_v8 }
 0xa37   :  { %v2895_v14 = vpop.f32.mrf.mxu1 }
 0xa39   :  { %v3571_v43 = vpop.f32.mrf.mxu1 }
 0xaf6   :  { %v2951_v30 = vpop.f32.mrf.mxu0 }
 0xaf7   :  { %v2952_v31 = vadd.f32 %v3151_v41, %v2951_v30 }
 0xaf8   :  { %v3576_v34 = vpop.f32.mrf.mxu0 }
 0xaf9   :  { %2958 = vst.msk [vmem:[#allocation2] sm:$0x3] %vm2957_vm8, %v2952_v31 }
 0xafa   :  { %v2954_v33 = vpop.f32.mrf.mxu0 }
 0xafb   :  { %3688 = shalt.err (!%p3685_p4)
}
 0xafc   :  { %2968 = dma.vmem_to_hbm [thread:$0]  %s2966_s2, 32, %s4406_s22, [#allocation3]   ;;  %v3577_v49 = vpop.f32.mrf.mxu0 }
 0xafd   :  { %3697 = dma.done.wait [#allocation3], 32  }
 0xafe   :  { %3698 = vsyncadd [#allocation3], 4294967264 }
 0xaff   :  { %2972 = vsyncpa [#allocation3], 1 }

</bundles_post_ra>
